<compile_context>
chip_gen: v6e
topology: v6e:2x2x1
jax: 0.10.0
libtpu: 0.0.40
codegen_flags: <defaults>
</compile_context>

<pallas_src>
import math

import jax
import jax.numpy as jnp
from jax.experimental import pallas as pl
from jax.experimental.pallas import tpu as pltpu

# ---------------- tiny synthetic BERT configuration ----------------
B = 2          # batch
S = 8          # sequence length (== max position embeddings here)
H = 128        # hidden size        (768 in bert-base)
NH = 2         # attention heads    (12 in bert-base)
DH = H // NH   # head dim
F = 256        # FFN intermediate   (3072 in bert-base)
V = 256        # vocab size         (30522 for bert-base-uncased)
DEMO = 8       # demographic_size
NLAYERS = 2    # encoder layers     (12 in bert-base)
LN_EPS = 1e-12

# rows of the packed per-layer vector slab `vecs` of shape (NLAYERS, 8, 3H)
_R_BQKV, _R_BO, _R_G1, _R_BE1, _R_B1, _R_B2, _R_G2, _R_BE2 = range(8)


# ---------------- in-kernel helpers ----------------
def _ln(x, gamma, beta):
    # Single-pass statistics: E[x] and E[x^2] are independent reductions
    # (no serial mean -> centered -> variance chain on the XLU).
    mu = jnp.mean(x, axis=-1, keepdims=True)
    var = jnp.mean(x * x, axis=-1, keepdims=True) - mu * mu
    return (x - mu) * jax.lax.rsqrt(var + LN_EPS) * gamma + beta


# ---------------- the single fused Pallas kernel (one batch row / step) ----------------
def _fused_forward_kernel(emb_ref, demo_ref, embln_ref,
                          wqkv_ref, wo_ref, w1_ref, w2_ref, vecs_ref,
                          wd_ref, wdec_ref, bdec_ref, o_ref):
    # ---- embedding LayerNorm ----
    x = _ln(emb_ref[...].reshape(S, H), embln_ref[0:1, :], embln_ref[1:2, :])   # (S, H) f32

    # ---- encoder layers, statically unrolled; x stays VMEM/vreg resident ----
    for l in range(NLAYERS):
        vl = vecs_ref[l]                                                        # (8, 3H) f32
        xb = x.astype(jnp.bfloat16)

        # fused QKV projection: one (S,H)@(H,3H) matmul; scale + biases pre-folded
        qkv = jnp.dot(xb, wqkv_ref[l],
                      preferred_element_type=jnp.float32) + vl[_R_BQKV:_R_BQKV + 1, :]
        q = qkv[:, 0 * H:1 * H].astype(jnp.bfloat16).reshape(S, NH, DH).transpose(1, 0, 2)
        k = qkv[:, 1 * H:2 * H].astype(jnp.bfloat16).reshape(S, NH, DH).transpose(1, 0, 2)
        v = qkv[:, 2 * H:3 * H].astype(jnp.bfloat16).reshape(S, NH, DH).transpose(1, 0, 2)

        # all heads at once (batched over the head axis)
        s = jnp.einsum('hqd,hkd->hqk', q, k,
                       preferred_element_type=jnp.float32)                      # (NH, S, S)
        s = s - jnp.max(s, axis=-1, keepdims=True)
        p = jnp.exp(s)
        p = p * pl.reciprocal(jnp.sum(p, axis=-1, keepdims=True), approx=True)
        ctx = jnp.einsum('hqk,hkd->hqd', p.astype(jnp.bfloat16), v,
                         preferred_element_type=jnp.float32)                    # (NH, S, DH)
        ctx = ctx.transpose(1, 0, 2).reshape(S, H)                              # heads -> lanes

        # single full-width output projection (K = NH*DH = H)
        attn = jnp.dot(ctx.astype(jnp.bfloat16), wo_ref[l],
                       preferred_element_type=jnp.float32) + vl[_R_BO:_R_BO + 1, :H]
        h1 = _ln(x + attn, vl[_R_G1:_R_G1 + 1, :H], vl[_R_BE1:_R_BE1 + 1, :H])

        ff = jnp.dot(h1.astype(jnp.bfloat16), w1_ref[l],
                     preferred_element_type=jnp.float32) + vl[_R_B1:_R_B1 + 1, :F]
        # TODO(synk): HF bert-base uses the exact erf GELU; tanh approximation here.
        ff = jax.nn.gelu(ff, approximate=True)
        ff = jnp.dot(ff.astype(jnp.bfloat16), w2_ref[l],
                     preferred_element_type=jnp.float32) + vl[_R_B2:_R_B2 + 1, :H]
        x = _ln(h1 + ff, vl[_R_G2:_R_G2 + 1, :H], vl[_R_BE2:_R_BE2 + 1, :H])

    # ---- demographic linear + broadcast add + decoder + log-softmax ----
    demo = demo_ref[...].reshape(1, DEMO).astype(jnp.bfloat16)
    # bias bd is folded into bdec on the host (bd @ Wdec + bdec), so no add here
    demo_embed = jnp.dot(demo, wd_ref[...], preferred_element_type=jnp.float32)  # (1, H)
    combined = x + demo_embed                                                     # unsqueeze(1) add

    logits = jnp.dot(combined.astype(jnp.bfloat16), wdec_ref[...],
                     preferred_element_type=jnp.float32) + bdec_ref[...]          # (S, V)
    m = jnp.max(logits, axis=-1, keepdims=True)
    lse = jnp.log(jnp.sum(jnp.exp(logits - m), axis=-1, keepdims=True)) + m
    o_ref[...] = (logits - lse).reshape(1, S, V).astype(o_ref.dtype)              # log-softmax


# ---------------- pallas_call wrapper ----------------
def _per_batch_spec(shape):
    rest = len(shape) - 1
    return pl.BlockSpec((1,) + tuple(shape[1:]),
                        lambda b, _r=rest: (b,) + (0,) * _r)


def _resident_spec(shape):
    rank = len(shape)
    # Same block every grid step -> Pallas keeps it resident (no per-step DMA).
    # TODO(synk): at bert-base scale use pl.Buffered(1)/layer-streaming instead
    # of all-resident double-buffered weights (v7x 64 MiB VMEM).
    return pl.BlockSpec(tuple(shape), lambda b, _r=rank: (0,) * _r)


def fused_forward(emb, demo3, p):
    batched = (emb, demo3)
    resident = (p["emb_ln"], p["Wqkv"], p["Wo"], p["W1"], p["W2"],
                p["vecs"], p["wd"], p["wdec"], p["bdec"])
    return pl.pallas_call(
        _fused_forward_kernel,
        out_shape=jax.ShapeDtypeStruct((B, S, V), jnp.float32),
        grid=(B,),
        in_specs=([_per_batch_spec(a.shape) for a in batched]
                  + [_resident_spec(a.shape) for a in resident]),
        out_specs=pl.BlockSpec((1, S, V), lambda b: (b, 0, 0)),
        compiler_params=pltpu.CompilerParams(
            dimension_semantics=("parallel",),           # use both TCs on v7x
            vmem_limit_bytes=64 * 1024 * 1024),
    )(*batched, *resident)


# ---------------- parameters (deterministic synthetic init, natural layout) ----------------
def init_params(key):
    keys = iter(jax.random.split(key, 32))

    def w(shape, scale=0.02):
        return scale * jax.random.normal(next(keys), shape, dtype=jnp.float32)

    zeros = lambda s: jnp.zeros(s, jnp.float32)
    ones = lambda s: jnp.ones(s, jnp.float32)

    return {
        # embeddings (f32; table lookup is plain-JAX glue outside the kernel)
        "word_emb": w((V, H)), "pos_emb": w((S, H)), "tt_emb": w((1, H)),
        "ln_emb_g": ones((1, H)), "ln_emb_b": zeros((1, H)),
        # encoder weights, one (H,H)/(H,F)/(F,H) matrix per layer
        "WQ": w((NLAYERS, H, H)), "BQ": zeros((NLAYERS, 1, H)),
        "WK": w((NLAYERS, H, H)), "BK": zeros((NLAYERS, 1, H)),
        "WV": w((NLAYERS, H, H)), "BV": zeros((NLAYERS, 1, H)),
        "WO": w((NLAYERS, H, H)), "BO": zeros((NLAYERS, 1, H)),
        "G1": ones((NLAYERS, 1, H)), "BE1": zeros((NLAYERS, 1, H)),
        "W1": w((NLAYERS, H, F)), "B1": zeros((NLAYERS, 1, F)),
        "W2": w((NLAYERS, F, H)), "B2": zeros((NLAYERS, 1, H)),
        "G2": ones((NLAYERS, 1, H)), "BE2": zeros((NLAYERS, 1, H)),
        # demographic_embedding: Linear(DEMO -> H), decoder: Linear(H -> V)
        "wd": w((DEMO, H)), "bd": zeros((1, H)),
        "wdec": w((H, V)), "bdec": zeros((1, V)),
    }


def pack_params(p):
    """Host-side (zero runtime cost) fusion/folding of parameters for the kernel."""
    scale = 1.0 / math.sqrt(DH)
    # fused QKV weight (1/sqrt(DH) folded into the Q third) and fused bias
    wqkv = jnp.concatenate([p["WQ"] * scale, p["WK"], p["WV"]], axis=-1)       # (NL, H, 3H)
    bqkv = jnp.concatenate([p["BQ"] * scale, p["BK"], p["BV"]], axis=-1)       # (NL, 1, 3H)

    def pad3h(v):
        return jnp.pad(v, ((0, 0), (0, 0), (0, 3 * H - v.shape[-1])))

    # one f32 slab holding every per-layer bias / LN vector (row order = _R_*)
    vecs = jnp.concatenate(
        [bqkv, pad3h(p["BO"]), pad3h(p["G1"]), pad3h(p["BE1"]),
         pad3h(p["B1"]), pad3h(p["B2"]), pad3h(p["G2"]), pad3h(p["BE2"])],
        axis=1)                                                                # (NL, 8, 3H)
    emb_ln = jnp.concatenate([p["ln_emb_g"], p["ln_emb_b"]], axis=0)           # (2, H)
    # fold the demographic bias through the decoder: (x + d@Wd + bd)@Wdec + bdec
    bdec = p["bd"] @ p["wdec"] + p["bdec"]                                     # (1, V)

    return {
        "word_emb": p["word_emb"], "pos_emb": p["pos_emb"], "tt_emb": p["tt_emb"],
        "emb_ln": emb_ln, "vecs": vecs, "bdec": bdec,
        "Wqkv": wqkv.astype(jnp.bfloat16), "Wo": p["WO"].astype(jnp.bfloat16),
        "W1": p["W1"].astype(jnp.bfloat16), "W2": p["W2"].astype(jnp.bfloat16),
        "wd": p["wd"].astype(jnp.bfloat16), "wdec": p["wdec"].astype(jnp.bfloat16),
    }


# ---------------- forward pass ----------------
def demographic_bert_forward(packed, input_ids, demographics):
    # BERT embedding lookup (glue); everything else runs in the fused kernel.
    emb = (jnp.take(packed["word_emb"], input_ids, axis=0)        # (B, S, H)
           + packed["pos_emb"][None, :, :]
           + packed["tt_emb"][None, :, :])                        # token_type id 0
    # TODO(synk): BertModel dropout layers are identity in eval mode; omitted.
    demo3 = demographics.reshape(B, 1, DEMO)
    return fused_forward(emb, demo3, packed)


if __name__ == "__main__":
    root = jax.random.PRNGKey(0)
    k_params, k_ids, k_demo = jax.random.split(root, 3)

    params = init_params(k_params)
    packed = pack_params(params)
    input_ids = jax.random.randint(k_ids, (B, S), 0, V, dtype=jnp.int32)
    demographics = jax.random.normal(k_demo, (B, DEMO), dtype=jnp.float32)

    fwd = jax.jit(demographic_bert_forward)
    log_probs = jax.block_until_ready(fwd(packed, input_ids, demographics))

    assert log_probs.shape == (B, S, V)
    # log-softmax rows must (approximately) exponentiate-sum to 1
    row_sums = jnp.exp(log_probs).sum(-1)
    assert bool(jnp.all(jnp.abs(row_sums - 1.0) < 1e-3))
    print("KERNEL_OK")
</pallas_src>

<mosaic_0001>
module attributes {stable_mosaic.version = 11 : i64} {
  func.func @_fused_forward_kernel(%arg0: i32, %arg1: memref<1x8x128xf32, #tpu.memory_space<vmem>>, %arg2: memref<1x1x8xf32, #tpu.memory_space<vmem>>, %arg3: memref<2x128xf32, #tpu.memory_space<vmem>>, %arg4: memref<2x128x384xbf16, #tpu.memory_space<vmem>>, %arg5: memref<2x128x128xbf16, #tpu.memory_space<vmem>>, %arg6: memref<2x128x256xbf16, #tpu.memory_space<vmem>>, %arg7: memref<2x256x128xbf16, #tpu.memory_space<vmem>>, %arg8: memref<2x8x384xf32, #tpu.memory_space<vmem>>, %arg9: memref<8x128xbf16, #tpu.memory_space<vmem>>, %arg10: memref<128x256xbf16, #tpu.memory_space<vmem>>, %arg11: memref<1x256xf32, #tpu.memory_space<vmem>>, %arg12: memref<1x8x256xf32, #tpu.memory_space<vmem>>) attributes {dimension_semantics = [#tpu.dimension_semantics<parallel>], iteration_bounds = array<i64: 2>, scalar_prefetch = 0 : i64, scratch_operands = 0 : i64, tpu.core_type = #tpu.core_type<tc>, window_params = [{transform_indices = @transform_0, window_bounds = array<i64: 1, 8, 128>}, {transform_indices = @transform_1, window_bounds = array<i64: 1, 1, 8>}, {pipeline_mode = #tpu.pipeline_mode<synchronous>, transform_indices = @transform_2, window_bounds = array<i64: 2, 128>}, {pipeline_mode = #tpu.pipeline_mode<synchronous>, transform_indices = @transform_3, window_bounds = array<i64: 2, 128, 384>}, {pipeline_mode = #tpu.pipeline_mode<synchronous>, transform_indices = @transform_4, window_bounds = array<i64: 2, 128, 128>}, {pipeline_mode = #tpu.pipeline_mode<synchronous>, transform_indices = @transform_5, window_bounds = array<i64: 2, 128, 256>}, {pipeline_mode = #tpu.pipeline_mode<synchronous>, transform_indices = @transform_6, window_bounds = array<i64: 2, 256, 128>}, {pipeline_mode = #tpu.pipeline_mode<synchronous>, transform_indices = @transform_7, window_bounds = array<i64: 2, 8, 384>}, {pipeline_mode = #tpu.pipeline_mode<synchronous>, transform_indices = @transform_8, window_bounds = array<i64: 8, 128>}, {pipeline_mode = #tpu.pipeline_mode<synchronous>, transform_indices = @transform_9, window_bounds = array<i64: 128, 256>}, {pipeline_mode = #tpu.pipeline_mode<synchronous>, transform_indices = @transform_10, window_bounds = array<i64: 1, 256>}, {transform_indices = @transform_11, window_bounds = array<i64: 1, 8, 256>}]} {
    %c0 = arith.constant 0 : index
    %c0_0 = arith.constant 0 : index
    %c0_1 = arith.constant 0 : index
    %0 = vector.load %arg1[%c0, %c0_0, %c0_1] : memref<1x8x128xf32, #tpu.memory_space<vmem>>, vector<1x8x128xf32>
    %1 = vector.shape_cast %0 : vector<1x8x128xf32> to vector<8x128xf32>
    %c0_2 = arith.constant 0 : index
    %c0_3 = arith.constant 0 : index
    %2 = vector.load %arg3[%c0_2, %c0_3] : memref<2x128xf32, #tpu.memory_space<vmem>>, vector<1x128xf32>
    %c1 = arith.constant 1 : index
    %c0_4 = arith.constant 0 : index
    %3 = vector.load %arg3[%c1, %c0_4] : memref<2x128xf32, #tpu.memory_space<vmem>>, vector<1x128xf32>
    %cst = arith.constant dense<0.000000e+00> : vector<8xf32>
    %4 = vector.multi_reduction <add>, %1, %cst [1] : vector<8x128xf32> to vector<8xf32>
    %5 = vector.shape_cast %4 : vector<8xf32> to vector<8x1xf32>
    %cst_5 = arith.constant 1.280000e+02 : f32
    %6 = vector.broadcast %cst_5 : f32 to vector<8x1xf32>
    %7 = arith.divf %5, %6 : vector<8x1xf32>
    %8 = arith.mulf %1, %1 : vector<8x128xf32>
    %cst_6 = arith.constant dense<0.000000e+00> : vector<8xf32>
    %9 = vector.multi_reduction <add>, %8, %cst_6 [1] : vector<8x128xf32> to vector<8xf32>
    %10 = vector.shape_cast %9 : vector<8xf32> to vector<8x1xf32>
    %cst_7 = arith.constant 1.280000e+02 : f32
    %11 = vector.broadcast %cst_7 : f32 to vector<8x1xf32>
    %12 = arith.divf %10, %11 : vector<8x1xf32>
    %13 = arith.mulf %7, %7 : vector<8x1xf32>
    %14 = arith.subf %12, %13 : vector<8x1xf32>
    %15 = vector.broadcast %7 : vector<8x1xf32> to vector<8x128xf32>
    %16 = arith.subf %1, %15 : vector<8x128xf32>
    %cst_8 = arith.constant 9.99999996E-13 : f32
    %17 = vector.broadcast %cst_8 : f32 to vector<8x1xf32>
    %18 = arith.addf %14, %17 : vector<8x1xf32>
    %19 = math.rsqrt %18 : vector<8x1xf32>
    %20 = vector.broadcast %19 : vector<8x1xf32> to vector<8x128xf32>
    %21 = arith.mulf %16, %20 : vector<8x128xf32>
    %22 = vector.broadcast %2 : vector<1x128xf32> to vector<8x128xf32>
    %23 = arith.mulf %21, %22 : vector<8x128xf32>
    %24 = vector.broadcast %3 : vector<1x128xf32> to vector<8x128xf32>
    %25 = arith.addf %23, %24 : vector<8x128xf32>
    %c0_9 = arith.constant 0 : index
    %c0_10 = arith.constant 0 : index
    %c0_11 = arith.constant 0 : index
    %26 = vector.load %arg8[%c0_9, %c0_10, %c0_11] : memref<2x8x384xf32, #tpu.memory_space<vmem>>, vector<1x8x384xf32>
    %27 = vector.shape_cast %26 : vector<1x8x384xf32> to vector<8x384xf32>
    %28 = arith.truncf %25 : vector<8x128xf32> to vector<8x128xbf16>
    %c0_12 = arith.constant 0 : index
    %c0_13 = arith.constant 0 : index
    %c0_14 = arith.constant 0 : index
    %29 = vector.load %arg4[%c0_12, %c0_13, %c0_14] : memref<2x128x384xbf16, #tpu.memory_space<vmem>>, vector<1x128x384xbf16>
    %30 = vector.shape_cast %29 : vector<1x128x384xbf16> to vector<128x384xbf16>
    %cst_15 = arith.constant dense<0.000000e+00> : vector<8x384xf32>
    %31 = tpu.matmul %28, %30, %cst_15 {dimension_numbers = #tpu.dot_dimension_numbers<[1], [0], [0], [1], [0, 0, 1, 1], [], []>} : vector<8x128xbf16>, vector<128x384xbf16>, vector<8x384xf32> -> vector<8x384xf32>
    %32 = vector.extract_strided_slice %27 {offsets = [0, 0], sizes = [1, 384], strides = [1, 1]} : vector<8x384xf32> to vector<1x384xf32>
    %33 = vector.broadcast %32 : vector<1x384xf32> to vector<8x384xf32>
    %34 = arith.addf %31, %33 : vector<8x384xf32>
    %35 = vector.extract_strided_slice %34 {offsets = [0, 0], sizes = [8, 128], strides = [1, 1]} : vector<8x384xf32> to vector<8x128xf32>
    %36 = arith.truncf %35 : vector<8x128xf32> to vector<8x128xbf16>
    %37 = vector.shape_cast %36 : vector<8x128xbf16> to vector<8x2x64xbf16>
    %38 = tpu.transpose %37, [1, 0, 2] : vector<8x2x64xbf16> -> vector<2x8x64xbf16>
    %39 = vector.extract_strided_slice %34 {offsets = [0, 128], sizes = [8, 128], strides = [1, 1]} : vector<8x384xf32> to vector<8x128xf32>
    %40 = arith.truncf %39 : vector<8x128xf32> to vector<8x128xbf16>
    %41 = vector.shape_cast %40 : vector<8x128xbf16> to vector<8x2x64xbf16>
    %42 = tpu.transpose %41, [1, 0, 2] : vector<8x2x64xbf16> -> vector<2x8x64xbf16>
    %43 = vector.extract_strided_slice %34 {offsets = [0, 256], sizes = [8, 128], strides = [1, 1]} : vector<8x384xf32> to vector<8x128xf32>
    %44 = arith.truncf %43 : vector<8x128xf32> to vector<8x128xbf16>
    %45 = vector.shape_cast %44 : vector<8x128xbf16> to vector<8x2x64xbf16>
    %46 = tpu.transpose %45, [1, 0, 2] : vector<8x2x64xbf16> -> vector<2x8x64xbf16>
    "tpu.trace_start"() <{level = 10 : i32, message = "hqd,hkd->hqk"}> : () -> ()
    %cst_16 = arith.constant dense<0.000000e+00> : vector<2x8x8xf32>
    %47 = tpu.matmul %38, %42, %cst_16 {dimension_numbers = #tpu.dot_dimension_numbers<[2], [2], [1], [1], [0, 0, 0, 1, 1, 1], [0], [0]>} : vector<2x8x64xbf16>, vector<2x8x64xbf16>, vector<2x8x8xf32> -> vector<2x8x8xf32>
    "tpu.trace_stop"() : () -> ()
    %cst_17 = arith.constant dense<0xFF800000> : vector<2x8xf32>
    %48 = vector.multi_reduction <maximumf>, %47, %cst_17 [2] : vector<2x8x8xf32> to vector<2x8xf32>
    %49 = vector.shape_cast %48 : vector<2x8xf32> to vector<2x8x1xf32>
    %50 = vector.broadcast %49 : vector<2x8x1xf32> to vector<2x8x8xf32>
    %51 = arith.subf %47, %50 : vector<2x8x8xf32>
    %52 = math.exp %51 : vector<2x8x8xf32>
    %cst_18 = arith.constant dense<0.000000e+00> : vector<2x8xf32>
    %53 = vector.multi_reduction <add>, %52, %cst_18 [2] : vector<2x8x8xf32> to vector<2x8xf32>
    %54 = vector.shape_cast %53 : vector<2x8xf32> to vector<2x8x1xf32>
    %55 = tpu.reciprocal %54 {approx = true} : vector<2x8x1xf32> -> vector<2x8x1xf32>
    %56 = vector.broadcast %55 : vector<2x8x1xf32> to vector<2x8x8xf32>
    %57 = arith.mulf %52, %56 : vector<2x8x8xf32>
    %58 = arith.truncf %57 : vector<2x8x8xf32> to vector<2x8x8xbf16>
    "tpu.trace_start"() <{level = 10 : i32, message = "hqk,hkd->hqd"}> : () -> ()
    %cst_19 = arith.constant dense<0.000000e+00> : vector<2x8x64xf32>
    %59 = tpu.matmul %58, %46, %cst_19 {dimension_numbers = #tpu.dot_dimension_numbers<[2], [1], [1], [2], [0, 0, 0, 1, 1, 2], [0], [0]>} : vector<2x8x8xbf16>, vector<2x8x64xbf16>, vector<2x8x64xf32> -> vector<2x8x64xf32>
    "tpu.trace_stop"() : () -> ()
    %60 = tpu.transpose %59, [1, 0, 2] : vector<2x8x64xf32> -> vector<8x2x64xf32>
    %61 = vector.shape_cast %60 : vector<8x2x64xf32> to vector<8x128xf32>
    %62 = arith.truncf %61 : vector<8x128xf32> to vector<8x128xbf16>
    %c0_20 = arith.constant 0 : index
    %c0_21 = arith.constant 0 : index
    %c0_22 = arith.constant 0 : index
    %63 = vector.load %arg5[%c0_20, %c0_21, %c0_22] : memref<2x128x128xbf16, #tpu.memory_space<vmem>>, vector<1x128x128xbf16>
    %64 = vector.shape_cast %63 : vector<1x128x128xbf16> to vector<128x128xbf16>
    %cst_23 = arith.constant dense<0.000000e+00> : vector<8x128xf32>
    %65 = tpu.matmul %62, %64, %cst_23 {dimension_numbers = #tpu.dot_dimension_numbers<[1], [0], [0], [1], [0, 0, 1, 1], [], []>} : vector<8x128xbf16>, vector<128x128xbf16>, vector<8x128xf32> -> vector<8x128xf32>
    %66 = vector.extract_strided_slice %27 {offsets = [1, 0], sizes = [1, 128], strides = [1, 1]} : vector<8x384xf32> to vector<1x128xf32>
    %67 = vector.broadcast %66 : vector<1x128xf32> to vector<8x128xf32>
    %68 = arith.addf %65, %67 : vector<8x128xf32>
    %69 = arith.addf %25, %68 : vector<8x128xf32>
    %70 = vector.extract_strided_slice %27 {offsets = [2, 0], sizes = [1, 128], strides = [1, 1]} : vector<8x384xf32> to vector<1x128xf32>
    %71 = vector.extract_strided_slice %27 {offsets = [3, 0], sizes = [1, 128], strides = [1, 1]} : vector<8x384xf32> to vector<1x128xf32>
    %cst_24 = arith.constant dense<0.000000e+00> : vector<8xf32>
    %72 = vector.multi_reduction <add>, %69, %cst_24 [1] : vector<8x128xf32> to vector<8xf32>
    %73 = vector.shape_cast %72 : vector<8xf32> to vector<8x1xf32>
    %cst_25 = arith.constant 1.280000e+02 : f32
    %74 = vector.broadcast %cst_25 : f32 to vector<8x1xf32>
    %75 = arith.divf %73, %74 : vector<8x1xf32>
    %76 = arith.mulf %69, %69 : vector<8x128xf32>
    %cst_26 = arith.constant dense<0.000000e+00> : vector<8xf32>
    %77 = vector.multi_reduction <add>, %76, %cst_26 [1] : vector<8x128xf32> to vector<8xf32>
    %78 = vector.shape_cast %77 : vector<8xf32> to vector<8x1xf32>
    %cst_27 = arith.constant 1.280000e+02 : f32
    %79 = vector.broadcast %cst_27 : f32 to vector<8x1xf32>
    %80 = arith.divf %78, %79 : vector<8x1xf32>
    %81 = arith.mulf %75, %75 : vector<8x1xf32>
    %82 = arith.subf %80, %81 : vector<8x1xf32>
    %83 = vector.broadcast %75 : vector<8x1xf32> to vector<8x128xf32>
    %84 = arith.subf %69, %83 : vector<8x128xf32>
    %cst_28 = arith.constant 9.99999996E-13 : f32
    %85 = vector.broadcast %cst_28 : f32 to vector<8x1xf32>
    %86 = arith.addf %82, %85 : vector<8x1xf32>
    %87 = math.rsqrt %86 : vector<8x1xf32>
    %88 = vector.broadcast %87 : vector<8x1xf32> to vector<8x128xf32>
    %89 = arith.mulf %84, %88 : vector<8x128xf32>
    %90 = vector.broadcast %70 : vector<1x128xf32> to vector<8x128xf32>
    %91 = arith.mulf %89, %90 : vector<8x128xf32>
    %92 = vector.broadcast %71 : vector<1x128xf32> to vector<8x128xf32>
    %93 = arith.addf %91, %92 : vector<8x128xf32>
    %94 = arith.truncf %93 : vector<8x128xf32> to vector<8x128xbf16>
    %c0_29 = arith.constant 0 : index
    %c0_30 = arith.constant 0 : index
    %c0_31 = arith.constant 0 : index
    %95 = vector.load %arg6[%c0_29, %c0_30, %c0_31] : memref<2x128x256xbf16, #tpu.memory_space<vmem>>, vector<1x128x256xbf16>
    %96 = vector.shape_cast %95 : vector<1x128x256xbf16> to vector<128x256xbf16>
    %cst_32 = arith.constant dense<0.000000e+00> : vector<8x256xf32>
    %97 = tpu.matmul %94, %96, %cst_32 {dimension_numbers = #tpu.dot_dimension_numbers<[1], [0], [0], [1], [0, 0, 1, 1], [], []>} : vector<8x128xbf16>, vector<128x256xbf16>, vector<8x256xf32> -> vector<8x256xf32>
    %98 = vector.extract_strided_slice %27 {offsets = [4, 0], sizes = [1, 256], strides = [1, 1]} : vector<8x384xf32> to vector<1x256xf32>
    %99 = vector.broadcast %98 : vector<1x256xf32> to vector<8x256xf32>
    %100 = arith.addf %97, %99 : vector<8x256xf32>
    %101 = arith.mulf %100, %100 : vector<8x256xf32>
    %102 = arith.mulf %100, %101 : vector<8x256xf32>
    %cst_33 = arith.constant 4.471500e-02 : f32
    %103 = vector.broadcast %cst_33 : f32 to vector<8x256xf32>
    %104 = arith.mulf %103, %102 : vector<8x256xf32>
    %105 = arith.addf %100, %104 : vector<8x256xf32>
    %cst_34 = arith.constant 0.797884583 : f32
    %106 = vector.broadcast %cst_34 : f32 to vector<8x256xf32>
    %107 = arith.mulf %106, %105 : vector<8x256xf32>
    %108 = math.tanh %107 : vector<8x256xf32>
    %cst_35 = arith.constant 1.000000e+00 : f32
    %109 = vector.broadcast %cst_35 : f32 to vector<8x256xf32>
    %110 = arith.addf %109, %108 : vector<8x256xf32>
    %cst_36 = arith.constant 5.000000e-01 : f32
    %111 = vector.broadcast %cst_36 : f32 to vector<8x256xf32>
    %112 = arith.mulf %111, %110 : vector<8x256xf32>
    %113 = arith.mulf %100, %112 : vector<8x256xf32>
    %114 = arith.truncf %113 : vector<8x256xf32> to vector<8x256xbf16>
    %c0_37 = arith.constant 0 : index
    %c0_38 = arith.constant 0 : index
    %c0_39 = arith.constant 0 : index
    %115 = vector.load %arg7[%c0_37, %c0_38, %c0_39] : memref<2x256x128xbf16, #tpu.memory_space<vmem>>, vector<1x256x128xbf16>
    %116 = vector.shape_cast %115 : vector<1x256x128xbf16> to vector<256x128xbf16>
    %cst_40 = arith.constant dense<0.000000e+00> : vector<8x128xf32>
    %117 = tpu.matmul %114, %116, %cst_40 {dimension_numbers = #tpu.dot_dimension_numbers<[1], [0], [0], [1], [0, 0, 1, 1], [], []>} : vector<8x256xbf16>, vector<256x128xbf16>, vector<8x128xf32> -> vector<8x128xf32>
    %118 = vector.extract_strided_slice %27 {offsets = [5, 0], sizes = [1, 128], strides = [1, 1]} : vector<8x384xf32> to vector<1x128xf32>
    %119 = vector.broadcast %118 : vector<1x128xf32> to vector<8x128xf32>
    %120 = arith.addf %117, %119 : vector<8x128xf32>
    %121 = arith.addf %93, %120 : vector<8x128xf32>
    %122 = vector.extract_strided_slice %27 {offsets = [6, 0], sizes = [1, 128], strides = [1, 1]} : vector<8x384xf32> to vector<1x128xf32>
    %123 = vector.extract_strided_slice %27 {offsets = [7, 0], sizes = [1, 128], strides = [1, 1]} : vector<8x384xf32> to vector<1x128xf32>
    %cst_41 = arith.constant dense<0.000000e+00> : vector<8xf32>
    %124 = vector.multi_reduction <add>, %121, %cst_41 [1] : vector<8x128xf32> to vector<8xf32>
    %125 = vector.shape_cast %124 : vector<8xf32> to vector<8x1xf32>
    %cst_42 = arith.constant 1.280000e+02 : f32
    %126 = vector.broadcast %cst_42 : f32 to vector<8x1xf32>
    %127 = arith.divf %125, %126 : vector<8x1xf32>
    %128 = arith.mulf %121, %121 : vector<8x128xf32>
    %cst_43 = arith.constant dense<0.000000e+00> : vector<8xf32>
    %129 = vector.multi_reduction <add>, %128, %cst_43 [1] : vector<8x128xf32> to vector<8xf32>
    %130 = vector.shape_cast %129 : vector<8xf32> to vector<8x1xf32>
    %cst_44 = arith.constant 1.280000e+02 : f32
    %131 = vector.broadcast %cst_44 : f32 to vector<8x1xf32>
    %132 = arith.divf %130, %131 : vector<8x1xf32>
    %133 = arith.mulf %127, %127 : vector<8x1xf32>
    %134 = arith.subf %132, %133 : vector<8x1xf32>
    %135 = vector.broadcast %127 : vector<8x1xf32> to vector<8x128xf32>
    %136 = arith.subf %121, %135 : vector<8x128xf32>
    %cst_45 = arith.constant 9.99999996E-13 : f32
    %137 = vector.broadcast %cst_45 : f32 to vector<8x1xf32>
    %138 = arith.addf %134, %137 : vector<8x1xf32>
    %139 = math.rsqrt %138 : vector<8x1xf32>
    %140 = vector.broadcast %139 : vector<8x1xf32> to vector<8x128xf32>
    %141 = arith.mulf %136, %140 : vector<8x128xf32>
    %142 = vector.broadcast %122 : vector<1x128xf32> to vector<8x128xf32>
    %143 = arith.mulf %141, %142 : vector<8x128xf32>
    %144 = vector.broadcast %123 : vector<1x128xf32> to vector<8x128xf32>
    %145 = arith.addf %143, %144 : vector<8x128xf32>
    %c1_46 = arith.constant 1 : index
    %c0_47 = arith.constant 0 : index
    %c0_48 = arith.constant 0 : index
    %146 = vector.load %arg8[%c1_46, %c0_47, %c0_48] : memref<2x8x384xf32, #tpu.memory_space<vmem>>, vector<1x8x384xf32>
    %147 = vector.shape_cast %146 : vector<1x8x384xf32> to vector<8x384xf32>
    %148 = arith.truncf %145 : vector<8x128xf32> to vector<8x128xbf16>
    %c1_49 = arith.constant 1 : index
    %c0_50 = arith.constant 0 : index
    %c0_51 = arith.constant 0 : index
    %149 = vector.load %arg4[%c1_49, %c0_50, %c0_51] : memref<2x128x384xbf16, #tpu.memory_space<vmem>>, vector<1x128x384xbf16>
    %150 = vector.shape_cast %149 : vector<1x128x384xbf16> to vector<128x384xbf16>
    %cst_52 = arith.constant dense<0.000000e+00> : vector<8x384xf32>
    %151 = tpu.matmul %148, %150, %cst_52 {dimension_numbers = #tpu.dot_dimension_numbers<[1], [0], [0], [1], [0, 0, 1, 1], [], []>} : vector<8x128xbf16>, vector<128x384xbf16>, vector<8x384xf32> -> vector<8x384xf32>
    %152 = vector.extract_strided_slice %147 {offsets = [0, 0], sizes = [1, 384], strides = [1, 1]} : vector<8x384xf32> to vector<1x384xf32>
    %153 = vector.broadcast %152 : vector<1x384xf32> to vector<8x384xf32>
    %154 = arith.addf %151, %153 : vector<8x384xf32>
    %155 = vector.extract_strided_slice %154 {offsets = [0, 0], sizes = [8, 128], strides = [1, 1]} : vector<8x384xf32> to vector<8x128xf32>
    %156 = arith.truncf %155 : vector<8x128xf32> to vector<8x128xbf16>
    %157 = vector.shape_cast %156 : vector<8x128xbf16> to vector<8x2x64xbf16>
    %158 = tpu.transpose %157, [1, 0, 2] : vector<8x2x64xbf16> -> vector<2x8x64xbf16>
    %159 = vector.extract_strided_slice %154 {offsets = [0, 128], sizes = [8, 128], strides = [1, 1]} : vector<8x384xf32> to vector<8x128xf32>
    %160 = arith.truncf %159 : vector<8x128xf32> to vector<8x128xbf16>
    %161 = vector.shape_cast %160 : vector<8x128xbf16> to vector<8x2x64xbf16>
    %162 = tpu.transpose %161, [1, 0, 2] : vector<8x2x64xbf16> -> vector<2x8x64xbf16>
    %163 = vector.extract_strided_slice %154 {offsets = [0, 256], sizes = [8, 128], strides = [1, 1]} : vector<8x384xf32> to vector<8x128xf32>
    %164 = arith.truncf %163 : vector<8x128xf32> to vector<8x128xbf16>
    %165 = vector.shape_cast %164 : vector<8x128xbf16> to vector<8x2x64xbf16>
    %166 = tpu.transpose %165, [1, 0, 2] : vector<8x2x64xbf16> -> vector<2x8x64xbf16>
    "tpu.trace_start"() <{level = 10 : i32, message = "hqd,hkd->hqk"}> : () -> ()
    %cst_53 = arith.constant dense<0.000000e+00> : vector<2x8x8xf32>
    %167 = tpu.matmul %158, %162, %cst_53 {dimension_numbers = #tpu.dot_dimension_numbers<[2], [2], [1], [1], [0, 0, 0, 1, 1, 1], [0], [0]>} : vector<2x8x64xbf16>, vector<2x8x64xbf16>, vector<2x8x8xf32> -> vector<2x8x8xf32>
    "tpu.trace_stop"() : () -> ()
    %cst_54 = arith.constant dense<0xFF800000> : vector<2x8xf32>
    %168 = vector.multi_reduction <maximumf>, %167, %cst_54 [2] : vector<2x8x8xf32> to vector<2x8xf32>
    %169 = vector.shape_cast %168 : vector<2x8xf32> to vector<2x8x1xf32>
    %170 = vector.broadcast %169 : vector<2x8x1xf32> to vector<2x8x8xf32>
    %171 = arith.subf %167, %170 : vector<2x8x8xf32>
    %172 = math.exp %171 : vector<2x8x8xf32>
    %cst_55 = arith.constant dense<0.000000e+00> : vector<2x8xf32>
    %173 = vector.multi_reduction <add>, %172, %cst_55 [2] : vector<2x8x8xf32> to vector<2x8xf32>
    %174 = vector.shape_cast %173 : vector<2x8xf32> to vector<2x8x1xf32>
    %175 = tpu.reciprocal %174 {approx = true} : vector<2x8x1xf32> -> vector<2x8x1xf32>
    %176 = vector.broadcast %175 : vector<2x8x1xf32> to vector<2x8x8xf32>
    %177 = arith.mulf %172, %176 : vector<2x8x8xf32>
    %178 = arith.truncf %177 : vector<2x8x8xf32> to vector<2x8x8xbf16>
    "tpu.trace_start"() <{level = 10 : i32, message = "hqk,hkd->hqd"}> : () -> ()
    %cst_56 = arith.constant dense<0.000000e+00> : vector<2x8x64xf32>
    %179 = tpu.matmul %178, %166, %cst_56 {dimension_numbers = #tpu.dot_dimension_numbers<[2], [1], [1], [2], [0, 0, 0, 1, 1, 2], [0], [0]>} : vector<2x8x8xbf16>, vector<2x8x64xbf16>, vector<2x8x64xf32> -> vector<2x8x64xf32>
    "tpu.trace_stop"() : () -> ()
    %180 = tpu.transpose %179, [1, 0, 2] : vector<2x8x64xf32> -> vector<8x2x64xf32>
    %181 = vector.shape_cast %180 : vector<8x2x64xf32> to vector<8x128xf32>
    %182 = arith.truncf %181 : vector<8x128xf32> to vector<8x128xbf16>
    %c1_57 = arith.constant 1 : index
    %c0_58 = arith.constant 0 : index
    %c0_59 = arith.constant 0 : index
    %183 = vector.load %arg5[%c1_57, %c0_58, %c0_59] : memref<2x128x128xbf16, #tpu.memory_space<vmem>>, vector<1x128x128xbf16>
    %184 = vector.shape_cast %183 : vector<1x128x128xbf16> to vector<128x128xbf16>
    %cst_60 = arith.constant dense<0.000000e+00> : vector<8x128xf32>
    %185 = tpu.matmul %182, %184, %cst_60 {dimension_numbers = #tpu.dot_dimension_numbers<[1], [0], [0], [1], [0, 0, 1, 1], [], []>} : vector<8x128xbf16>, vector<128x128xbf16>, vector<8x128xf32> -> vector<8x128xf32>
    %186 = vector.extract_strided_slice %147 {offsets = [1, 0], sizes = [1, 128], strides = [1, 1]} : vector<8x384xf32> to vector<1x128xf32>
    %187 = vector.broadcast %186 : vector<1x128xf32> to vector<8x128xf32>
    %188 = arith.addf %185, %187 : vector<8x128xf32>
    %189 = arith.addf %145, %188 : vector<8x128xf32>
    %190 = vector.extract_strided_slice %147 {offsets = [2, 0], sizes = [1, 128], strides = [1, 1]} : vector<8x384xf32> to vector<1x128xf32>
    %191 = vector.extract_strided_slice %147 {offsets = [3, 0], sizes = [1, 128], strides = [1, 1]} : vector<8x384xf32> to vector<1x128xf32>
    %cst_61 = arith.constant dense<0.000000e+00> : vector<8xf32>
    %192 = vector.multi_reduction <add>, %189, %cst_61 [1] : vector<8x128xf32> to vector<8xf32>
    %193 = vector.shape_cast %192 : vector<8xf32> to vector<8x1xf32>
    %cst_62 = arith.constant 1.280000e+02 : f32
    %194 = vector.broadcast %cst_62 : f32 to vector<8x1xf32>
    %195 = arith.divf %193, %194 : vector<8x1xf32>
    %196 = arith.mulf %189, %189 : vector<8x128xf32>
    %cst_63 = arith.constant dense<0.000000e+00> : vector<8xf32>
    %197 = vector.multi_reduction <add>, %196, %cst_63 [1] : vector<8x128xf32> to vector<8xf32>
    %198 = vector.shape_cast %197 : vector<8xf32> to vector<8x1xf32>
    %cst_64 = arith.constant 1.280000e+02 : f32
    %199 = vector.broadcast %cst_64 : f32 to vector<8x1xf32>
    %200 = arith.divf %198, %199 : vector<8x1xf32>
    %201 = arith.mulf %195, %195 : vector<8x1xf32>
    %202 = arith.subf %200, %201 : vector<8x1xf32>
    %203 = vector.broadcast %195 : vector<8x1xf32> to vector<8x128xf32>
    %204 = arith.subf %189, %203 : vector<8x128xf32>
    %cst_65 = arith.constant 9.99999996E-13 : f32
    %205 = vector.broadcast %cst_65 : f32 to vector<8x1xf32>
    %206 = arith.addf %202, %205 : vector<8x1xf32>
    %207 = math.rsqrt %206 : vector<8x1xf32>
    %208 = vector.broadcast %207 : vector<8x1xf32> to vector<8x128xf32>
    %209 = arith.mulf %204, %208 : vector<8x128xf32>
    %210 = vector.broadcast %190 : vector<1x128xf32> to vector<8x128xf32>
    %211 = arith.mulf %209, %210 : vector<8x128xf32>
    %212 = vector.broadcast %191 : vector<1x128xf32> to vector<8x128xf32>
    %213 = arith.addf %211, %212 : vector<8x128xf32>
    %214 = arith.truncf %213 : vector<8x128xf32> to vector<8x128xbf16>
    %c1_66 = arith.constant 1 : index
    %c0_67 = arith.constant 0 : index
    %c0_68 = arith.constant 0 : index
    %215 = vector.load %arg6[%c1_66, %c0_67, %c0_68] : memref<2x128x256xbf16, #tpu.memory_space<vmem>>, vector<1x128x256xbf16>
    %216 = vector.shape_cast %215 : vector<1x128x256xbf16> to vector<128x256xbf16>
    %cst_69 = arith.constant dense<0.000000e+00> : vector<8x256xf32>
    %217 = tpu.matmul %214, %216, %cst_69 {dimension_numbers = #tpu.dot_dimension_numbers<[1], [0], [0], [1], [0, 0, 1, 1], [], []>} : vector<8x128xbf16>, vector<128x256xbf16>, vector<8x256xf32> -> vector<8x256xf32>
    %218 = vector.extract_strided_slice %147 {offsets = [4, 0], sizes = [1, 256], strides = [1, 1]} : vector<8x384xf32> to vector<1x256xf32>
    %219 = vector.broadcast %218 : vector<1x256xf32> to vector<8x256xf32>
    %220 = arith.addf %217, %219 : vector<8x256xf32>
    %221 = arith.mulf %220, %220 : vector<8x256xf32>
    %222 = arith.mulf %220, %221 : vector<8x256xf32>
    %cst_70 = arith.constant 4.471500e-02 : f32
    %223 = vector.broadcast %cst_70 : f32 to vector<8x256xf32>
    %224 = arith.mulf %223, %222 : vector<8x256xf32>
    %225 = arith.addf %220, %224 : vector<8x256xf32>
    %cst_71 = arith.constant 0.797884583 : f32
    %226 = vector.broadcast %cst_71 : f32 to vector<8x256xf32>
    %227 = arith.mulf %226, %225 : vector<8x256xf32>
    %228 = math.tanh %227 : vector<8x256xf32>
    %cst_72 = arith.constant 1.000000e+00 : f32
    %229 = vector.broadcast %cst_72 : f32 to vector<8x256xf32>
    %230 = arith.addf %229, %228 : vector<8x256xf32>
    %cst_73 = arith.constant 5.000000e-01 : f32
    %231 = vector.broadcast %cst_73 : f32 to vector<8x256xf32>
    %232 = arith.mulf %231, %230 : vector<8x256xf32>
    %233 = arith.mulf %220, %232 : vector<8x256xf32>
    %234 = arith.truncf %233 : vector<8x256xf32> to vector<8x256xbf16>
    %c1_74 = arith.constant 1 : index
    %c0_75 = arith.constant 0 : index
    %c0_76 = arith.constant 0 : index
    %235 = vector.load %arg7[%c1_74, %c0_75, %c0_76] : memref<2x256x128xbf16, #tpu.memory_space<vmem>>, vector<1x256x128xbf16>
    %236 = vector.shape_cast %235 : vector<1x256x128xbf16> to vector<256x128xbf16>
    %cst_77 = arith.constant dense<0.000000e+00> : vector<8x128xf32>
    %237 = tpu.matmul %234, %236, %cst_77 {dimension_numbers = #tpu.dot_dimension_numbers<[1], [0], [0], [1], [0, 0, 1, 1], [], []>} : vector<8x256xbf16>, vector<256x128xbf16>, vector<8x128xf32> -> vector<8x128xf32>
    %238 = vector.extract_strided_slice %147 {offsets = [5, 0], sizes = [1, 128], strides = [1, 1]} : vector<8x384xf32> to vector<1x128xf32>
    %239 = vector.broadcast %238 : vector<1x128xf32> to vector<8x128xf32>
    %240 = arith.addf %237, %239 : vector<8x128xf32>
    %241 = arith.addf %213, %240 : vector<8x128xf32>
    %242 = vector.extract_strided_slice %147 {offsets = [6, 0], sizes = [1, 128], strides = [1, 1]} : vector<8x384xf32> to vector<1x128xf32>
    %243 = vector.extract_strided_slice %147 {offsets = [7, 0], sizes = [1, 128], strides = [1, 1]} : vector<8x384xf32> to vector<1x128xf32>
    %cst_78 = arith.constant dense<0.000000e+00> : vector<8xf32>
    %244 = vector.multi_reduction <add>, %241, %cst_78 [1] : vector<8x128xf32> to vector<8xf32>
    %245 = vector.shape_cast %244 : vector<8xf32> to vector<8x1xf32>
    %cst_79 = arith.constant 1.280000e+02 : f32
    %246 = vector.broadcast %cst_79 : f32 to vector<8x1xf32>
    %247 = arith.divf %245, %246 : vector<8x1xf32>
    %248 = arith.mulf %241, %241 : vector<8x128xf32>
    %cst_80 = arith.constant dense<0.000000e+00> : vector<8xf32>
    %249 = vector.multi_reduction <add>, %248, %cst_80 [1] : vector<8x128xf32> to vector<8xf32>
    %250 = vector.shape_cast %249 : vector<8xf32> to vector<8x1xf32>
    %cst_81 = arith.constant 1.280000e+02 : f32
    %251 = vector.broadcast %cst_81 : f32 to vector<8x1xf32>
    %252 = arith.divf %250, %251 : vector<8x1xf32>
    %253 = arith.mulf %247, %247 : vector<8x1xf32>
    %254 = arith.subf %252, %253 : vector<8x1xf32>
    %255 = vector.broadcast %247 : vector<8x1xf32> to vector<8x128xf32>
    %256 = arith.subf %241, %255 : vector<8x128xf32>
    %cst_82 = arith.constant 9.99999996E-13 : f32
    %257 = vector.broadcast %cst_82 : f32 to vector<8x1xf32>
    %258 = arith.addf %254, %257 : vector<8x1xf32>
    %259 = math.rsqrt %258 : vector<8x1xf32>
    %260 = vector.broadcast %259 : vector<8x1xf32> to vector<8x128xf32>
    %261 = arith.mulf %256, %260 : vector<8x128xf32>
    %262 = vector.broadcast %242 : vector<1x128xf32> to vector<8x128xf32>
    %263 = arith.mulf %261, %262 : vector<8x128xf32>
    %264 = vector.broadcast %243 : vector<1x128xf32> to vector<8x128xf32>
    %265 = arith.addf %263, %264 : vector<8x128xf32>
    %c0_83 = arith.constant 0 : index
    %c0_84 = arith.constant 0 : index
    %c0_85 = arith.constant 0 : index
    %266 = vector.load %arg2[%c0_83, %c0_84, %c0_85] : memref<1x1x8xf32, #tpu.memory_space<vmem>>, vector<1x1x8xf32>
    %267 = vector.shape_cast %266 : vector<1x1x8xf32> to vector<1x8xf32>
    %268 = arith.truncf %267 : vector<1x8xf32> to vector<1x8xbf16>
    %c0_86 = arith.constant 0 : index
    %c0_87 = arith.constant 0 : index
    %269 = vector.load %arg9[%c0_86, %c0_87] : memref<8x128xbf16, #tpu.memory_space<vmem>>, vector<8x128xbf16>
    %cst_88 = arith.constant dense<0.000000e+00> : vector<1x128xf32>
    %270 = tpu.matmul %268, %269, %cst_88 {dimension_numbers = #tpu.dot_dimension_numbers<[1], [0], [0], [1], [0, 0, 1, 1], [], []>} : vector<1x8xbf16>, vector<8x128xbf16>, vector<1x128xf32> -> vector<1x128xf32>
    %271 = vector.broadcast %270 : vector<1x128xf32> to vector<8x128xf32>
    %272 = arith.addf %265, %271 : vector<8x128xf32>
    %273 = arith.truncf %272 : vector<8x128xf32> to vector<8x128xbf16>
    %c0_89 = arith.constant 0 : index
    %c0_90 = arith.constant 0 : index
    %274 = vector.load %arg10[%c0_89, %c0_90] : memref<128x256xbf16, #tpu.memory_space<vmem>>, vector<128x256xbf16>
    %cst_91 = arith.constant dense<0.000000e+00> : vector<8x256xf32>
    %275 = tpu.matmul %273, %274, %cst_91 {dimension_numbers = #tpu.dot_dimension_numbers<[1], [0], [0], [1], [0, 0, 1, 1], [], []>} : vector<8x128xbf16>, vector<128x256xbf16>, vector<8x256xf32> -> vector<8x256xf32>
    %c0_92 = arith.constant 0 : index
    %c0_93 = arith.constant 0 : index
    %276 = vector.load %arg11[%c0_92, %c0_93] : memref<1x256xf32, #tpu.memory_space<vmem>>, vector<1x256xf32>
    %277 = vector.broadcast %276 : vector<1x256xf32> to vector<8x256xf32>
    %278 = arith.addf %275, %277 : vector<8x256xf32>
    %cst_94 = arith.constant dense<0xFF800000> : vector<8xf32>
    %279 = vector.multi_reduction <maximumf>, %278, %cst_94 [1] : vector<8x256xf32> to vector<8xf32>
    %280 = vector.shape_cast %279 : vector<8xf32> to vector<8x1xf32>
    %281 = vector.broadcast %280 : vector<8x1xf32> to vector<8x256xf32>
    %282 = arith.subf %278, %281 : vector<8x256xf32>
    %283 = math.exp %282 : vector<8x256xf32>
    %cst_95 = arith.constant dense<0.000000e+00> : vector<8xf32>
    %284 = vector.multi_reduction <add>, %283, %cst_95 [1] : vector<8x256xf32> to vector<8xf32>
    %285 = vector.shape_cast %284 : vector<8xf32> to vector<8x1xf32>
    %286 = math.log %285 : vector<8x1xf32>
    %287 = arith.addf %286, %280 : vector<8x1xf32>
    %288 = vector.broadcast %287 : vector<8x1xf32> to vector<8x256xf32>
    %289 = arith.subf %278, %288 : vector<8x256xf32>
    %290 = vector.shape_cast %289 : vector<8x256xf32> to vector<1x8x256xf32>
    %c0_96 = arith.constant 0 : index
    %c0_97 = arith.constant 0 : index
    %c0_98 = arith.constant 0 : index
    %291 = vector.load %arg12[%c0_96, %c0_97, %c0_98] : memref<1x8x256xf32, #tpu.memory_space<vmem>>, vector<1x8x256xf32>
    tpu.vector_store %arg12[%c0_96, %c0_97, %c0_98], %290 {strides = array<i32>} : memref<1x8x256xf32, #tpu.memory_space<vmem>>, vector<1x8x256xf32>,
    return
  }
  func.func @transform_0(%arg0: i32) -> (i32, i32, i32) {
    %c0_i32 = arith.constant 0 : i32
    %c0_i32_0 = arith.constant 0 : i32
    %c0_i32_1 = arith.constant 0 : i32
    return %arg0, %c0_i32, %c0_i32_0 : i32, i32, i32
  }
  func.func @transform_1(%arg0: i32) -> (i32, i32, i32) {
    %c0_i32 = arith.constant 0 : i32
    %c0_i32_0 = arith.constant 0 : i32
    %c0_i32_1 = arith.constant 0 : i32
    return %arg0, %c0_i32, %c0_i32_0 : i32, i32, i32
  }
  func.func @transform_2(%arg0: i32) -> (i32, i32) {
    %c0_i32 = arith.constant 0 : i32
    %c0_i32_0 = arith.constant 0 : i32
    %c0_i32_1 = arith.constant 0 : i32
    return %c0_i32, %c0_i32_0 : i32, i32
  }
  func.func @transform_3(%arg0: i32) -> (i32, i32, i32) {
    %c0_i32 = arith.constant 0 : i32
    %c0_i32_0 = arith.constant 0 : i32
    %c0_i32_1 = arith.constant 0 : i32
    %c0_i32_2 = arith.constant 0 : i32
    return %c0_i32, %c0_i32_0, %c0_i32_1 : i32, i32, i32
  }
  func.func @transform_4(%arg0: i32) -> (i32, i32, i32) {
    %c0_i32 = arith.constant 0 : i32
    %c0_i32_0 = arith.constant 0 : i32
    %c0_i32_1 = arith.constant 0 : i32
    %c0_i32_2 = arith.constant 0 : i32
    return %c0_i32, %c0_i32_0, %c0_i32_1 : i32, i32, i32
  }
  func.func @transform_5(%arg0: i32) -> (i32, i32, i32) {
    %c0_i32 = arith.constant 0 : i32
    %c0_i32_0 = arith.constant 0 : i32
    %c0_i32_1 = arith.constant 0 : i32
    %c0_i32_2 = arith.constant 0 : i32
    return %c0_i32, %c0_i32_0, %c0_i32_1 : i32, i32, i32
  }
  func.func @transform_6(%arg0: i32) -> (i32, i32, i32) {
    %c0_i32 = arith.constant 0 : i32
    %c0_i32_0 = arith.constant 0 : i32
    %c0_i32_1 = arith.constant 0 : i32
    %c0_i32_2 = arith.constant 0 : i32
    return %c0_i32, %c0_i32_0, %c0_i32_1 : i32, i32, i32
  }
  func.func @transform_7(%arg0: i32) -> (i32, i32, i32) {
    %c0_i32 = arith.constant 0 : i32
    %c0_i32_0 = arith.constant 0 : i32
    %c0_i32_1 = arith.constant 0 : i32
    %c0_i32_2 = arith.constant 0 : i32
    return %c0_i32, %c0_i32_0, %c0_i32_1 : i32, i32, i32
  }
  func.func @transform_8(%arg0: i32) -> (i32, i32) {
    %c0_i32 = arith.constant 0 : i32
    %c0_i32_0 = arith.constant 0 : i32
    %c0_i32_1 = arith.constant 0 : i32
    return %c0_i32, %c0_i32_0 : i32, i32
  }
  func.func @transform_9(%arg0: i32) -> (i32, i32) {
    %c0_i32 = arith.constant 0 : i32
    %c0_i32_0 = arith.constant 0 : i32
    %c0_i32_1 = arith.constant 0 : i32
    return %c0_i32, %c0_i32_0 : i32, i32
  }
  func.func @transform_10(%arg0: i32) -> (i32, i32) {
    %c0_i32 = arith.constant 0 : i32
    %c0_i32_0 = arith.constant 0 : i32
    %c0_i32_1 = arith.constant 0 : i32
    return %c0_i32, %c0_i32_0 : i32, i32
  }
  func.func @transform_11(%arg0: i32) -> (i32, i32, i32) {
    %c0_i32 = arith.constant 0 : i32
    %c0_i32_0 = arith.constant 0 : i32
    %c0_i32_1 = arith.constant 0 : i32
    return %arg0, %c0_i32, %c0_i32_0 : i32, i32, i32
  }
}

</mosaic_0001>

<bundles_post_ra>
// kernel: demographic_bert_forward.1
= control target key start
LH: loop header
LB: loop body
LE: loop exit
PB: predicated region body
PF: predicated region fallthrough
CT: control target
= control target key end

     0   :  { %16 = vsyncpa [#allocation3], 0  ;;  %s5469_s0 = inlined_call_operand.vmem [shape: f32[2,8,128], index: 0, kind: input, shape index: {}]   ;;  %s5470_s1 = inlined_call_operand.vmem [shape: f32[2,1,8], index: 1, kind: input, shape index: {}]   ;;  %s5471_s2 = inlined_call_operand.vmem [shape: f32[2,128], index: 2, kind: input, shape index: {}]   ;;  %s5472_s3 = inlined_call_operand.hbm [shape: bf16[2,128,384], index: 3, kind: input, shape index: {}]   ;;  %s5473_s4 = inlined_call_operand.vmem [shape: bf16[2,128,128], index: 4, kind: input, shape index: {}]   ;;  %s5474_s5 = inlined_call_operand.hbm [shape: bf16[2,128,256], index: 5, kind: input, shape index: {}]   ;;  %s5475_s6 = inlined_call_operand.hbm [shape: bf16[2,256,128], index: 6, kind: input, shape index: {}]   ;;  %s5476_s7 = inlined_call_operand.vmem [shape: f32[2,8,384], index: 7, kind: input, shape index: {}]   ;;  %s5477_s8 = inlined_call_operand.vmem [shape: bf16[8,128], index: 8, kind: input, shape index: {}]   ;;  %s5478_s9 = inlined_call_operand.hbm [shape: bf16[128,256], index: 9, kind: input, shape index: {}]   ;;  %s5479_s10 = inlined_call_operand.vmem [shape: f32[1,256], index: 10, kind: input, shape index: {}]   ;;  %s5480_s11 = inlined_call_operand.hbm [shape: f32[2,8,256], index: 11, kind: output, shape index: {}]  }
   0x1   :  { %17 = vsyncpa [#allocation6], 0 }
   0x2   :  { %18 = vsyncpa [#allocation9], 0 }
   0x3   :  { %19 = vsyncpa [#allocation4], 0 }
   0x4   :  { %21 = vsyncpa [#allocation4 + $0x1], 0  ;;  %s4835_s17 = smov 0   ;;  %s4837_s18 = smov 0  }
   0x5   :  { %s4839_s19 = smov 0   ;;  %s4841_s20 = smov 0  }
   0x6 LB: > { %5485 = sst [smem:[#allocation15_spill]] %s4752_s19  ;;  %s4856_s21 = sadd.s32 4294967295, %s4756_s20   ;;  %s4756_s20 = sphi %s4841_s20, %s5493_s20   ;;  %s4752_s19 = sphi %s4839_s19, %s5495_s19   ;;  %s4748_s18 = sphi %s4837_s18, %s5497_s18   ;;  %s4744_s17 = sphi %s4835_s17, %s5496_s17  }
   0x7   : > { %s3834_s22 = sadd.s32 4294967294, %s4756_s20   ;;  %s4860_s23 = sadd.s32 1, %s4756_s20  }
   0x8   : > { %5486 = sst [smem:[#allocation16_spill]] %s4860_s23  ;;  %s275_s24 = sadd.s32 1, %s4752_s19 }
   0x9   : > { %s272_s25 = ssub.s32 %s4756_s20, %s4860_s23  ;;  %p285_p0 = scmp.ne.s32.totalorder %s4752_s19, %s4748_s18 }
   0xa   : > { %p273_p1 = scmp.eq.s32.totalorder %s272_s25, 0  ;;  %p286_p2 = scmp.eq.s32.totalorder %s4856_s21, 1 }
   0xb   : > { %p291_p3 = scmp.ne.s32.totalorder %s4748_s18, %s4744_s17  ;;  %p292_p4 = scmp.eq.s32.totalorder %s3834_s22, 1 }
   0xc   : > { %s4871_s26 = scalar_select %p273_p1, %s4752_s19, %s275_s24  }
   0xd   : > { %p4873_p5 = por %p286_p2, %p285_p0  ;;  %p4877_p6 = por %p292_p4, %p291_p3 }
   0xe   : > { %5487 = sst [smem:[#allocation17_spill]] %s4871_s26  ;;  %p3835_p7 = scmp.ge.s32.totalorder %s4756_s20, 1 }
   0xf   : > { %p299_p8 = scmp.lt.s32.totalorder %s4756_s20, 3  ;;  %p4299_p9 = scmp.eq.s32.totalorder %s4856_s21, 0 }
  0x10   : > { %s4758_s30 = smov [#allocation5]   ;;  %s4759_s14 = smov [#allocation2]  }
  0x11   : > { %p4884_p10 = pnand %p3835_p7, %p299_p8  ;;  %s330_s12 = sshll.u32 %s4758_s30, 4  ;;  %s331_s12 = int_to_ptr.vmem [resolvable:$true] %s330_s12 }
  0x12   : > { %s314_s15 = sshll.u32 %s4759_s14, 4  ;;  %s4591_s16 = scalar_lea.vmem %s331_s12, 4096  ;;  %s315_s15 = int_to_ptr.vmem [resolvable:$true] %s314_s15 }
  0x13   : > { %p4282_p11 = pneg %p4884_p10  ;;  %p4592_p0 = scmp.ne.s32.totalorder %s331_s12, %s4591_s16 }
  0x14   : > { %p4599_p3 = scmp.lt.s32.totalorder %s331_s12, %s331_s12  ;;  %p4600_p4 = scmp.lt.s32.totalorder %s4591_s16, %s4591_s16 }
  0x15   : > { %p4892_p12 = pnand %p4299_p9, %p4282_p11 }
  0x16   : > { %p4601_p7 = por %p4600_p4, %p4599_p3 }
  0x17   : > { %p4582_p13 = pneg %p4892_p12 }
  0x19   : > { %p4594_p1 = pnand %p4592_p0, %p4582_p13 }
  0x1b   : > { %p4595_p2 = pneg %p4594_p1 }
  0x1d   : > { %p4602_p8 = pnand %p4601_p7, %p4595_p2 }
  0x1f   : > { %4605 = shalt.err (!%p4602_p8)
}
  0x20   : > { %s5484_s22 = smov 128   ;;  %s4761_s24 = smov 8  }
  0x21   : > { %4288 = dma.hbm_to_vmem [thread:$0]  (!%p4892_p12), %s5474_s5, 4096, %s331_s12, [#allocation6], %s5484_s22, %s5484_s22, %s4761_s24  }
  0x22   : > { %s4617_s14 = scalar_lea.vmem %s315_s15, 6144  ;;  %p4625_p2 = scmp.lt.s32.totalorder %s315_s15, %s315_s15 }
  0x23   : > { %p4618_p11 = scmp.ne.s32.totalorder %s315_s15, %s4617_s14  ;;  %p4626_p3 = scmp.lt.s32.totalorder %s4617_s14, %s4617_s14 }
  0x25   : > { %p4620_p0 = pnand %p4618_p11, %p4582_p13  ;;  %p4627_p4 = por %p4626_p3, %p4625_p2 }
  0x27   : > { %p4621_p1 = pneg %p4620_p0 }
  0x29   : > { %p4628_p7 = pnand %p4627_p4, %p4621_p1 }
  0x2b   : > { %4631 = shalt.err (!%p4628_p7)
}
  0x2c   : > { %s4762_s16 = smov 192   ;;  %s4763_s26 = smov 12  }
  0x2d   : > { %4285 = dma.hbm_to_vmem [thread:$0]  (!%p4892_p12), %s5472_s3, 6144, %s315_s15, [#allocation3], %s4762_s16, %s4762_s16, %s4763_s26  }
  0x2e   : > { %s4764_s12 = smov [#allocation7]  }
  0x2f   : > { %s343_s25 = sshll.u32 %s4764_s12, 4  ;;  %s344_s25 = int_to_ptr.vmem [resolvable:$true] %s343_s25 }
  0x30   : > { %s4643_s30 = scalar_lea.vmem %s344_s25, 4096  ;;  %p4651_p1 = scmp.lt.s32.totalorder %s344_s25, %s344_s25 }
  0x31   : > { %p4644_p8 = scmp.ne.s32.totalorder %s344_s25, %s4643_s30  ;;  %p4652_p2 = scmp.lt.s32.totalorder %s4643_s30, %s4643_s30 }
  0x33   : > { %p4646_p11 = pnand %p4644_p8, %p4582_p13  ;;  %p4653_p3 = por %p4652_p2, %p4651_p1 }
  0x35   : > { %p4647_p0 = pneg %p4646_p11 }
  0x37   : > { %p4654_p4 = pnand %p4653_p3, %p4647_p0 }
  0x39   : > { %4657 = shalt.err (!%p4654_p4)
}
  0x3a   : > { %s4765_s14 = smov 64   ;;  %s4766_s22 = smov 4  }
  0x3b   : > { %4291 = dma.hbm_to_vmem [thread:$0]  (!%p4892_p12), %s5475_s6, 4096, %s344_s25, [#allocation6], %s4765_s14, %s4765_s14, %s4766_s22  }
  0x3c   : > { %s4767_s26 = smov [#allocation8]  }
  0x3d   : > { %s362_s15 = sshll.u32 %s4767_s26, 4  ;;  %s363_s15 = int_to_ptr.vmem [resolvable:$true] %s362_s15 }
  0x3e   : > { %s4669_s16 = scalar_lea.vmem %s363_s15, 2048  ;;  %p4677_p0 = scmp.lt.s32.totalorder %s363_s15, %s363_s15 }
  0x3f   : > { %p4670_p7 = scmp.ne.s32.totalorder %s363_s15, %s4669_s16  ;;  %p4678_p1 = scmp.lt.s32.totalorder %s4669_s16, %s4669_s16 }
  0x41   : > { %p4672_p8 = pnand %p4670_p7, %p4582_p13  ;;  %p4679_p2 = por %p4678_p1, %p4677_p0 }
  0x43   : > { %p4673_p11 = pneg %p4672_p8 }
  0x45   : > { %p4680_p3 = pnand %p4679_p2, %p4673_p11 }
  0x47   : > { %4683 = shalt.err (!%p4680_p3)
}
  0x48   : > { %s5492_s12 = smov 128   ;;  %394 = sbr.rel (%p4884_p10) target bundleno = 5153 (0x1421), region = 64 }
  0x49   : > { %4294 = dma.hbm_to_vmem [thread:$0]  (!%p4892_p12), %s5478_s9, 2048, %s363_s15, [#allocation9], %s5492_s12, %s5492_s12, %s4761_s24  }
  0x4d   : > { %4727 = dma.done.wait (%p4299_p9), [#allocation3], 6144  }
  0x4e   : > { %4729 = vsyncadd (%p4299_p9), [#allocation3], 4294961152 }
  0x4f   : > { %4731 = dma.done.wait (%p4299_p9), [#allocation6], 8192  }
  0x50   : > { %4733 = vsyncadd (%p4299_p9), [#allocation6], 4294959104 }
  0x51   : > { %4735 = dma.done.wait (%p4299_p9), [#allocation9], 2048  }
  0x52   : > { %4737 = vsyncadd (%p4299_p9), [#allocation9], 4294965248  ;;  %p448_p10 = scmp.lt.s32.totalorder %s4856_s21, 1  ;;  %v4356_v2 = vld [vmem:[#allocation2 + $0xac] ss:$12 sps:$4 sm:$0xff]   ;;  %v4768_v5 = vmov 0.0   ;;  %v519_v43 = vlaneseq }
  0x53   : > { %v4358_v3 = vld [vmem:[#allocation2 + $0xa8] ss:$12 sps:$4 sm:$0xff]   ;;  %v4359_v4 = vld [vmem:[#allocation2 + $0xb0] ss:$12 sps:$4 sm:$0xff]   ;;  %659 = vmatprep.subr.bf16.mxu0 %v4356_v2  ;;  %4130 = vmatprep.subr.bf16.mxu1 %v4768_v5  ;;  %v4363_v8 = vld [vmem:[#allocation2 + $0x98] ss:$12 sps:$4 sm:$0xff]  }
  0x54   : > { %s4952_s29 = scalar_select %p448_p10, %s4856_s21, 1  ;;  %660 = vmatpush1.bf16.msra.mxu0 %v4358_v3  ;;  %4131 = vmatpush3.bf16.msra.mxu1 %v4359_v4  ;;  %v4360_v6 = vld [vmem:[#allocation2 + $0x94] ss:$12 sps:$4 sm:$0xff]   ;;  %v4362_v7 = vld [vmem:[#allocation2 + $0x90] ss:$12 sps:$4 sm:$0xff]   ;;  %v4769_v22 = vmov 0  }
  0x55   : > { %4132 = vmatprep.subr.bf16.mxu1 %v4768_v5  ;;  %661 = vmatprep.subr.bf16.mxu0 %v4360_v6  ;;  %v4364_v9 = vld [vmem:[#allocation2 + $0x7c] ss:$12 sps:$4 sm:$0xff]   ;;  %v4366_v10 = vld [vmem:[#allocation2 + $0x78] ss:$12 sps:$4 sm:$0xff]   ;;  %v4367_v11 = vld [vmem:[#allocation2 + $0x80] ss:$12 sps:$4 sm:$0xff]  }
  0x56   : > { %s3847_s13 = sshll.u32 %s4952_s29, 3  ;;  %v4368_v12 = vld [vmem:[#allocation2 + $0x64] ss:$12 sps:$4 sm:$0xff]   ;;  %v4370_v13 = vld [vmem:[#allocation2 + $0x60] ss:$12 sps:$4 sm:$0xff]   ;;  %691 = vmatprep.mubr.bf16.mxu0 %v4769_v22  ;;  %vm4770_vm0 = vmmov 0   ;;  %s454_s12 = scalar_lea.vmem %s5470_s1, %s4952_s29 }
  0x57   : > { %s451_s14 = scalar_lea.vmem %s5469_s0, %s3847_s13  ;;  %v4371_v14 = vld [vmem:[#allocation2 + $0x68] ss:$12 sps:$4 sm:$0xff]   ;;  %v4372_v15 = vld [vmem:[#allocation2 + $0x4c] ss:$12 sps:$4 sm:$0xff]   ;;  %v4375_v17 = vld [vmem:[#allocation2 + $0x50] ss:$12 sps:$4 sm:$0xff]   ;;  %4146 = vmatprep.mubr.msk.bf16.mxu1 %vm4770_vm0, %v4768_v5 }
  0x58   : > { %v4958_v0 = vld [vmem:[%s451_s14] sm:$0xff]  ;;  %662 = vmatpush1.bf16.msra.mxu0 %v4362_v7  ;;  %4133 = vmatpush3.bf16.msra.mxu1 %v4363_v8  ;;  %v4374_v16 = vld [vmem:[#allocation2 + $0x48] ss:$12 sps:$4 sm:$0xff]   ;;  %v4378_v19 = vld [vmem:[#allocation2 + $0x30] ss:$12 sps:$4 sm:$0xff]   ;;  %v4991_v44 = vshrl.u32 %v519_v43, 7 }
  0x59   : > { %459 = vadd.xlane.f32.xlu0 %v4958_v0  ;;  %v463_v1 = vmul.f32 %v4958_v0, %v4958_v0  ;;  %4134 = vmatprep.subr.bf16.mxu1 %v4768_v5  ;;  %v4376_v18 = vld [vmem:[#allocation2 + $0x34] ss:$12 sps:$4 sm:$0xff]   ;;  %v4379_v20 = vld [vmem:[#allocation2 + $0x38] ss:$12 sps:$4 sm:$0xff]   ;;  %v4380_v21 = vld [vmem:[#allocation2 + $0x1c] ss:$12 sps:$4 sm:$0xff]  }
  0x5a   : > { %663 = vmatprep.subr.bf16.mxu0 %v4364_v9  ;;  %v4382_v23 = vld [vmem:[#allocation2 + $0x18] ss:$12 sps:$4 sm:$0xff]   ;;  %v4383_v24 = vld [vmem:[#allocation2 + $0x20] ss:$12 sps:$4 sm:$0xff]   ;;  %v4387_v27 = vld [vmem:[#allocation2 + $0x8] ss:$12 sps:$4 sm:$0xff]  }
  0x5b   : > { %v4384_v25 = vld [vmem:[#allocation2 + $0x4] ss:$12 sps:$4 sm:$0xff]   ;;  %v4386_v26 = vld [vmem:[#allocation2] ss:$12 sps:$4 sm:$0xff]   ;;  %v4999_v46 = vsub.s32 0, %v4991_v44  ;;  %s4771_s13 = smov 64  }
  0x5c   : > { %664 = vmatpush1.bf16.msra.mxu0 %v4366_v10  ;;  %4135 = vmatpush3.bf16.msra.mxu1 %v4367_v11  ;;  %v3848_v37 = vld [vmem:[%s5471_s2] ss:$0 sm:$0xff]  ;;  %v3849_v39 = vld [vmem:[%s5471_s2 + $0x1] ss:$0 sm:$0xff]  ;;  %v4996_v45 = vld [vmem:[%s5476_s7 + $0x8] sm:$0xff]  ;;  %vm1157_vm1 = vcmask 523264  }
  0x5d   : > { %464 = vadd.xlane.f32.xlu0 %v463_v1  ;;  %4136 = vmatprep.subr.bf16.mxu1 %v4768_v5  ;;  %v5004_v47 = vld [vmem:[%s5476_s7] sm:$0xff]  ;;  %v526_v48 = vrot.slane %v4996_v45, %v4999_v46  ;;  %v4772_v62 = vmov 1983009808   ;;  %v4773_v2 = vmov 1934713408   ;;  %vm1250_vm2 = vcmask 64512  }
  0x5e   : > { %665 = vmatprep.subr.bf16.mxu0 %v4368_v12  ;;  %v522_v51 = vrot.slane %v5004_v47, %v4999_v46  ;;  %v745_v63 = vunpack.c.l.s4 %v4772_v62  ;;  %v753_v3 = vunpack.c.l.s4 %v4773_v2  ;;  %vm1278_vm3 = vcmask 1043456   ;;  %s445_s30 = sand.u32 1, %s4748_s18   ;;  %s4031_s19 = sshll.u32 %s4856_s21, 8 }
  0x5f   : > { %s3846_s14 = sshll.u32 %s445_s30, 4  ;;  %s5434_s16 = scalar_lea.hbm %s5480_s11, %s4031_s19 }
  0x60   : > { %666 = vmatpush1.bf16.msra.mxu0 %v4370_v13  ;;  %4137 = vmatpush3.bf16.msra.mxu1 %v4371_v14  ;;  %v754_v6 = vunpack.c.0.s8 %v753_v3  ;;  %s447_s23 = scalar_lea.vmem [#allocation10], %s3846_s14  ;;  %s4774_s21 = smov [#allocation10]  }
  0x61   : > { %667 = vmatprep.subr.bf16.mxu0 %v4372_v15  ;;  %4138 = vmatprep.subr.bf16.mxu1 %v4768_v5  ;;  %s3725_s26 = sshll.u32 %s447_s23, 4  ;;  %s4688_s25 = sshll.u32 %s4774_s21, 4  ;;  %s3726_s26 = int_to_ptr.vmem [resolvable:$true] %s3725_s26  ;;  %s4689_s25 = int_to_ptr.vmem [resolvable:$false] %s4688_s25 }
  0x62   : > { %v5021_v9 = vsub.s32 %v754_v6, %v4991_v44  ;;  %s4684_s22 = scalar_lea.vmem %s3726_s26, 256  ;;  %s4690_s29 = scalar_lea.vmem %s4689_s25, 512 }
  0x63   : > { %p4685_p9 = scmp.ne.s32.totalorder %s3726_s26, %s4684_s22  ;;  %p4691_p4 = scmp.lt.s32.totalorder %s3726_s26, %s4689_s25 }
  0x64   : > { %668 = vmatpush1.bf16.msra.mxu0 %v4374_v16  ;;  %4139 = vmatpush3.bf16.msra.mxu1 %v4375_v17  ;;  %p4692_p7 = scmp.lt.s32.totalorder %s4690_s29, %s4684_s22 }
  0x65   : > { %669 = vmatprep.subr.bf16.mxu0 %v4376_v18  ;;  %4140 = vmatprep.subr.bf16.mxu1 %v4768_v5  ;;  %p4686_p12 = pnand %p4685_p9, %p4873_p5 }
  0x66   : > { %p4693_p8 = por %p4692_p7, %p4691_p4 }
  0x67   : > { %p4687_p13 = pneg %p4686_p12 }
  0x68   : > { %670 = vmatpush1.bf16.msra.mxu0 %v4378_v19  ;;  %4141 = vmatpush3.bf16.msra.mxu1 %v4379_v20 }
  0x69   : > { %671 = vmatprep.subr.bf16.mxu0 %v4380_v21  ;;  %4142 = vmatprep.subr.bf16.mxu1 %v4768_v5  ;;  %p4694_p11 = pnand %p4693_p8, %p4687_p13 }
  0x6c   : > { %672 = vmatpush1.bf16.msra.mxu0 %v4382_v23  ;;  %4143 = vmatpush3.bf16.msra.mxu1 %v4383_v24 }
  0x6d   : > { %673 = vmatprep.subr.bf16.mxu0 %v4384_v25  ;;  %4144 = vmatprep.subr.bf16.mxu1 %v4768_v5 }
  0x70   : > { %674 = vmatpush1.bf16.msra.mxu0 %v4386_v26  ;;  %4145 = vmatpush3.bf16.msra.mxu1 %v4387_v27 }
  0x71   : > { %4150 = vmatprep.subr.bf16.mxu0 %v4768_v5  ;;  %4156 = vmatprep.subr.bf16.mxu1 %v4768_v5 }
  0xe2   : > { %v460_v28 = vpop.xlane.xlu0 %459 }
  0xe3   : > { %v462_v29 = vmul.f32 0.0078125, %v460_v28 }
  0xe5   : > { %v467_v31 = vmul.f32 %v462_v29, %v462_v29  ;;  %v469_v35 = vsub.f32 %v4958_v0, %v462_v29  ;;  %v746_v0 = vunpack.c.0.s8 %v745_v63 }
  0xe6   : > { %v465_v30 = vpop.xlane.xlu0 %464 }
  0xe7   : > { %v466_v32 = vmul.f32 0.0078125, %v465_v30  ;;  %v5015_v1 = vsub.s32 %v746_v0, %v4991_v44 }
  0xe9   : > { %v468_v33 = vsub.f32 %v466_v32, %v467_v31 }
  0xeb   : > { %v470_v34 = vadd.f32 1e-12, %v468_v33 }
  0xed   : > { %4540 = vrsqrt.f32 %v470_v34 }
  0xfa   : > { %v4541_v36 = vpop.eup %4540 }
  0xfb   : > { %v472_v38 = vmul.f32 %v4541_v36, %v469_v35 }
  0xfd   : > { %v477_v40 = vmul.f32 %v3848_v37, %v472_v38 }
  0xff   : > { %v4983_v41 = vadd.f32 %v3849_v39, %v477_v40 }
 0x101   : > { %v486_v42 = vpack.c.bf16 %v4983_v41, %v4983_v41 }
 0x103   : > { %692 = vmatmul.mubr.bf16.vlgmr.msra.gmra.mxu0 %v486_v42  ;;  %4147 = vmatmul.mubr.bf16.vlgmr.msra.gmra.mxu1 %v486_v42 }
 0x104   : > { %4152 = vmatprep.mubr.msk.bf16.mxu0 %vm4770_vm0, %v4768_v5  ;;  %4158 = vmatprep.mubr.msk.bf16.mxu1 %vm4770_vm0, %v4768_v5 }
 0x1c3   : > { %v693_v49 = vpop.f32.mrf.mxu0  ;;  %v5008_v50 = vpop.f32.mrf.mxu1 }
 0x1c4   : > { %v694_v57 = vadd.f32 %v693_v49, %v522_v51 }
 0x1c5   : > { %v695_v52 = vpop.f32.mrf.mxu0  ;;  %v4148_v53 = vpop.f32.mrf.mxu1 }
 0x1c6   : > { %v696_v54 = vadd.f32 %v695_v52, %v526_v48  ;;  %v740_v61 = vpack.c.bf16 %v694_v57, %v694_v57 }
 0x1c7   : > { %v697_v55 = vpop.f32.mrf.mxu0  ;;  %v737_v56 = vpop.f32.mrf.mxu1 }
 0x1c8   : > { %v879_v58 = vpack.c.bf16 %v696_v54, %v696_v54  ;;  %v750_v4 = vrot.slane %v740_v61, %v5015_v1 }
 0x1c9   : > { %v698_v59 = vpop.f32.mrf.mxu0  ;;  %v4149_v60 = vpop.f32.mrf.mxu1 }
 0x1ca   : > { %881 = vrot.lane.b32.xlu1 %v879_v58, %s4771_s13  ;;  %v889_v7 = vrot.slane %v879_v58, %v5015_v1  ;;  %v751_v8 = vcombine.high %v750_v4, %v4769_v22  ;;  %v758_v11 = vrot.slane %v750_v4, %v5021_v9 }
 0x1cc   : > { %v890_v10 = vcombine.high %v889_v7, %v4769_v22  ;;  %v765_v12 = vrot.slane %v751_v8, %v5021_v9  ;;  %v897_v13 = vrot.slane %v889_v7, %v5021_v9  ;;  %v766_v15 = vcombine.high %v758_v11, %v4769_v22 }
 0x1cd   : > { %v797_v24 = vshrl.u32 %v758_v11, 16 }
 0x1ce   : > { %742 = vrot.lane.b32.xlu1 %v740_v61, %s4771_s13  ;;  %v904_v14 = vrot.slane %v890_v10, %v5021_v9  ;;  %v767_v16 = vcombine.high %v765_v12, %v4769_v22  ;;  %v905_v19 = vcombine.high %v897_v13, %v4769_v22  ;;  %v805_v25 = vshrl.u32 %v766_v15, 16 }
 0x1cf   : > { %v813_v26 = vshrl.u32 %v765_v12, 16  ;;  %v936_v29 = vshrl.u32 %v897_v13, 16 }
 0x1d0   : > { %v906_v20 = vcombine.high %v904_v14, %v4769_v22  ;;  %v821_v27 = vshrl.u32 %v767_v16, 16  ;;  %v944_v33 = vshrl.u32 %v905_v19, 16  ;;  %v952_v34 = vshrl.u32 %v904_v14, 16 }
 0x1d2   : > { %v960_v35 = vshrl.u32 %v906_v20, 16 }
 0x23c   : > { %v882_v17 = vpop.permute.xlu1 %881 }
 0x23d   : > { %v914_v18 = vrot.slane %v882_v17, %v5015_v1 }
 0x23f   : > { %v915_v21 = vcombine.high %v914_v18, %v4769_v22  ;;  %v922_v23 = vrot.slane %v914_v18, %v5021_v9 }
 0x240   : > { %v743_v28 = vpop.permute.xlu1 %742 }
 0x241   : > { %v929_v30 = vrot.slane %v915_v21, %v5021_v9  ;;  %v930_v31 = vcombine.high %v922_v23, %v4769_v22  ;;  %v937_v32 = vshrl.u32 %v922_v23, 16  ;;  %v775_v36 = vrot.slane %v743_v28, %v5015_v1 }
 0x242   : > { %v934_v38 = vpack.i.b16 %v922_v23, %v897_v13 }
 0x243   : > { %v931_v37 = vcombine.high %v929_v30, %v4769_v22  ;;  %v938_v39 = vpack.i.b16 %v937_v32, %v936_v29  ;;  %v945_v40 = vshrl.u32 %v930_v31, 16  ;;  %v950_v42 = vpack.i.b16 %v929_v30, %v904_v14 }
 0x244   : > { %v953_v43 = vshrl.u32 %v929_v30, 16  ;;  %v776_v48 = vcombine.high %v775_v36, %v4769_v22  ;;  %v783_v49 = vrot.slane %v775_v36, %v5021_v9  ;;  %v942_v51 = vpack.i.b16 %v930_v31, %v905_v19 }
 0x245   : > { %v946_v52 = vpack.i.b16 %v945_v40, %v944_v33  ;;  %v958_v53 = vpack.i.b16 %v931_v37, %v906_v20  ;;  %v961_v54 = vshrl.u32 %v931_v37, 16  ;;  %v964_v56 = vcombine.low %v934_v38, %v950_v42 }
 0x246   : > { %v954_v55 = vpack.i.b16 %v953_v43, %v952_v34  ;;  %v790_v57 = vrot.slane %v776_v48, %v5021_v9  ;;  %v791_v58 = vcombine.high %v783_v49, %v4769_v22  ;;  %v795_v61 = vpack.i.b16 %v783_v49, %v758_v11 }
 0x247   : > { %v962_v59 = vpack.i.b16 %v961_v54, %v960_v35  ;;  %v972_v60 = vcombine.low %v942_v51, %v958_v53  ;;  %v798_v62 = vshrl.u32 %v783_v49, 16  ;;  %v971_v63 = vrot.slane %v964_v56, %v5015_v1 }
 0x248   : > { %v988_v0 = vcombine.low %v938_v39, %v954_v55  ;;  %v792_v2 = vcombine.high %v790_v57, %v4769_v22  ;;  %v803_v3 = vpack.i.b16 %v791_v58, %v766_v15  ;;  %v806_v7 = vshrl.u32 %v791_v58, 16 }
 0x249   : > { %v996_v4 = vcombine.low %v946_v52, %v962_v59  ;;  %v799_v6 = vpack.i.b16 %v798_v62, %v797_v24  ;;  %v811_v8 = vpack.i.b16 %v790_v57, %v765_v12  ;;  %v814_v10 = vshrl.u32 %v790_v57, 16 }
 0x24a   : > { %v819_v13 = vpack.i.b16 %v792_v2, %v767_v16  ;;  %v822_v14 = vshrl.u32 %v792_v2, 16  ;;  %v979_v17 = vrot.slane %v972_v60, %v5015_v1  ;;  %v807_v18 = vpack.i.b16 %v806_v7, %v805_v25 }
 0x24b   : > { %v825_v19 = vcombine.low %v795_v61, %v811_v8  ;;  %v995_v11 = vrot.slane %v988_v0, %v5015_v1  ;;  %v1003_v20 = vrot.slane %v996_v4, %v5015_v1  ;;  %v815_v21 = vpack.i.b16 %v814_v10, %v813_v26 }
 0x24c   : > { %v823_v23 = vpack.i.b16 %v822_v14, %v821_v27  ;;  %v833_v28 = vcombine.low %v803_v3, %v819_v13  ;;  %v980_v29 = vcombine.low %v971_v63, %v979_v17  ;;  %v485_v13 = vld [vmem:[%s5476_s7 + $0x10] sm:$0xff] }
 0x24d   : > { %v1004_v15 = vcombine.low %v995_v11, %v1003_v20  ;;  %v849_v30 = vcombine.low %v799_v6, %v815_v21  ;;  %v832_v31 = vrot.slane %v825_v19, %v5015_v1  ;;  %v530_v14 = vrot.slane %v485_v13, %v4999_v46 }
 0x24e   : > { %v840_v24 = vrot.slane %v833_v28, %v5015_v1  ;;  %v857_v12 = vcombine.low %v807_v18, %v823_v23  ;;  %v987_v16 = vrot.slane %v980_v29, %v5021_v9 }
 0x24f   : > { %v1011_v25 = vrot.slane %v1004_v15, %v5021_v9  ;;  %v856_v32 = vrot.slane %v849_v30, %v5015_v1  ;;  %v735_v17 = vadd.f32 %v5008_v50, %v530_v14 }
 0x250   : > { %v864_v33 = vrot.slane %v857_v12, %v5015_v1  ;;  %v841_v26 = vcombine.low %v832_v31, %v840_v24  ;;  %v1015_v34 = vshrl.u32 %v987_v16, 16 }
 0x251   : > { %v1014_v27 = vpack.i.b16 %v1011_v25, %v987_v16  ;;  %v1016_v35 = vshrl.u32 %v1011_v25, 16  ;;  %v1018_v18 = vpack.c.bf16 %v735_v17, %v735_v17 }
 0x252   : > { %v865_v36 = vcombine.low %v856_v32, %v864_v33  ;;  %v848_v42 = vrot.slane %v841_v26, %v5021_v9 }
 0x253   : > { %v1162_v37 = vsel %vm1157_vm1, %v1014_v27, 0  ;;  %v1017_v38 = vpack.i.b16 %v1016_v35, %v1015_v34  ;;  %v1028_v11 = vrot.slane %v1018_v18, %v5015_v1 }
 0x254   : > { %4151 = vmatpush3.bf16.xpose.msra.mxu0 %v1162_v37  ;;  %v872_v39 = vrot.slane %v865_v36, %v5021_v9  ;;  %v876_v49 = vshrl.u32 %v848_v42, 16 }
 0x255   : > { %v1208_v40 = vsel %vm1157_vm1, %v1017_v38, 0  ;;  %4162 = vmatprep.subr.bf16.mxu0 %v4768_v5  ;;  %v1029_v21 = vcombine.high %v1028_v11, %v4769_v22  ;;  %v1036_v23 = vrot.slane %v1028_v11, %v5021_v9 }
 0x256   : > { %4157 = vmatpush3.bf16.xpose.msra.mxu1 %v1208_v40  ;;  %v877_v43 = vshrl.u32 %v872_v39, 16  ;;  %v875_v48 = vpack.i.b16 %v872_v39, %v848_v42 }
 0x257   : > { %4168 = vmatprep.subr.bf16.mxu1 %v4768_v5  ;;  %v1043_v29 = vrot.slane %v1029_v21, %v5021_v9  ;;  %v1044_v24 = vcombine.high %v1036_v23, %v4769_v22  ;;  %v1075_v25 = vshrl.u32 %v1036_v23, 16  ;;  %v4391_v21 = vld [vmem:[%s5473_s4 + $0x20] sm:$0xff]  }
 0x258   : > { %v878_v51 = vpack.i.b16 %v877_v43, %v876_v49 }
 0x259   : > { %v1045_v12 = vcombine.high %v1043_v29, %v4769_v22  ;;  %v1083_v33 = vshrl.u32 %v1044_v24, 16  ;;  %v1091_v34 = vshrl.u32 %v1043_v29, 16 }
 0x25b   : > { %4153 = vmatmul.mubr.msk.bf16.vlgmr.msra.gmra.mxu0 %vm1157_vm1, %v875_v48  ;;  %v1099_v38 = vshrl.u32 %v1045_v12, 16 }
 0x25c   : > { %4164 = vmatprep.mubr.msk.bf16.mxu0 %vm4770_vm0, %v4768_v5 }
 0x25d   : > { %4159 = vmatmul.mubr.msk.bf16.vlgmr.msra.gmra.mxu1 %vm1157_vm1, %v878_v51 }
 0x25e   : > { %4170 = vmatprep.mubr.msk.bf16.mxu1 %vm4770_vm0, %v4768_v5 }
 0x31b   : > { %v1198_v52 = vpop.f32.mrf.mxu0 }
 0x31c   : > { %v1251_v53 = vsel %vm1250_vm2, %v1198_v52, -inf }
 0x31d   : > { %v1244_v54 = vpop.f32.mrf.mxu1  ;;  %1252 = vmax.xlane.f32.xlu0 %v1251_v53  ;;  %v4154_v55 = vpop.f32.mrf.mxu0 }
 0x31e   : > { %v1254_v56 = vsel %vm1250_vm2, %v1244_v54, -inf }
 0x31f   : > { %1255 = vmax.xlane.f32.xlu1 %v1254_v56  ;;  %v1201_v57 = vpop.f32.mrf.mxu0  ;;  %v4160_v58 = vpop.f32.mrf.mxu1 }
 0x321   : > { %v4155_v59 = vpop.f32.mrf.mxu0  ;;  %v1247_v60 = vpop.f32.mrf.mxu1 }
 0x323   : > { %v4161_v61 = vpop.f32.mrf.mxu1 }
 0x3a6   : > { %v1253_v62 = vpop.xlane.xlu0 %1252 }
 0x3a7   : > { %v1257_v63 = vsub.f32 %v1198_v52, %v1253_v62 }
 0x3a8   : > { %v1256_v0 = vpop.xlane.xlu1 %1255 }
 0x3a9   : > { %v1259_v2 = vmul.f32 1.442695, %v1257_v63  ;;  %v1258_v3 = vsub.f32 %v1244_v54, %v1256_v0 }
 0x3ab   : > { %4542 = vpow2.f32 %v1259_v2  ;;  %v1261_v4 = vmul.f32 1.442695, %v1258_v3 }
 0x3ad   : > { %4544 = vpow2.f32 %v1261_v4 }
 0x3b8   : > { %v4543_v6 = vpop.eup %4542 }
 0x3b9   : > { %v1263_v7 = vsel %vm1250_vm2, %v4543_v6, 0.0 }
 0x3ba   : > { %v5069_v8 = vpop.eup %4544  ;;  %1264 = vadd.xlane.f32.xlu0 %v1263_v7 }
 0x3bb   : > { %v1266_v10 = vsel %vm1250_vm2, %v5069_v8, 0.0 }
 0x3be   : > { %1267 = vadd.xlane.f32.xlu0 %v1266_v10 }
 0x3d4   : > { %1020 = vrot.lane.b32.xlu0 %v1018_v18, %s4771_s13 }
 0x443   : > { %v1265_v19 = vpop.xlane.xlu0 %1264 }
 0x444   : > { %4546 = vrcp.f32 %v1265_v19 }
 0x447   : > { %v1268_v20 = vpop.xlane.xlu0 %1267 }
 0x448   : > { %4548 = vrcp.f32 %v1268_v20  ;;  %v4390_v20 = vld [vmem:[%s5473_s4 + $0x28] sm:$0xff]  }
 0x44b   : > { %v1021_v28 = vpop.permute.xlu0 %1020 }
 0x44c   : > { %v1053_v15 = vrot.slane %v1021_v28, %v5015_v1  ;;  %v4393_v28 = vld [vmem:[%s5473_s4 + $0x10] sm:$0xff]  }
 0x44e   : > { %v1054_v50 = vcombine.high %v1053_v15, %v4769_v22  ;;  %v1061_v30 = vrot.slane %v1053_v15, %v5021_v9 }
 0x450   : > { %v1068_v16 = vrot.slane %v1054_v50, %v5021_v9  ;;  %v1069_v31 = vcombine.high %v1061_v30, %v4769_v22  ;;  %v1076_v32 = vshrl.u32 %v1061_v30, 16  ;;  %v1073_v35 = vpack.i.b16 %v1061_v30, %v1036_v23  ;;  %v4392_v23 = vld [vmem:[%s5473_s4 + $0x18] sm:$0xff]  }
 0x451   : > { %v4547_v63 = vpop.eup %4546 }
 0x452   : > { %v1070_v26 = vcombine.high %v1068_v16, %v4769_v22  ;;  %v1084_v27 = vshrl.u32 %v1069_v31, 16  ;;  %v1089_v36 = vpack.i.b16 %v1068_v16, %v1043_v29  ;;  %v1092_v37 = vshrl.u32 %v1068_v16, 16  ;;  %v4394_v29 = vld [vmem:[%s5473_s4 + $0x8] sm:$0xff]  }
 0x453   : > { %v1081_v39 = vpack.i.b16 %v1069_v31, %v1044_v24  ;;  %v1077_v43 = vpack.i.b16 %v1076_v32, %v1075_v25  ;;  %v1271_v10 = vmul.f32 %v4547_v63, %v4543_v6  ;;  %v4388_v6 = vld [vmem:[%s5473_s4 + $0x38] sm:$0xff]  }
 0x454   : > { %v1097_v40 = vpack.i.b16 %v1070_v26, %v1045_v12  ;;  %v1100_v42 = vshrl.u32 %v1070_v26, 16  ;;  %v1093_v48 = vpack.i.b16 %v1092_v37, %v1091_v34  ;;  %v1103_v49 = vcombine.low %v1073_v35, %v1089_v36 }
 0x455   : > { %v1085_v51 = vpack.i.b16 %v1084_v27, %v1083_v33  ;;  %v4549_v2 = vpop.eup %4548  ;;  %v1273_v19 = vpack.c.bf16 %v1271_v10, %v1271_v10  ;;  %v4398_v10 = vld [vmem:[#allocation5 + $0x74] ss:$8 sps:$4 sm:$0xff]  }
 0x456   : > { %v1101_v52 = vpack.i.b16 %v1100_v42, %v1099_v38  ;;  %v1111_v53 = vcombine.low %v1081_v39, %v1097_v40  ;;  %v1127_v54 = vcombine.low %v1077_v43, %v1093_v48  ;;  %v1110_v55 = vrot.slane %v1103_v49, %v5015_v1 }
 0x457   : > { %v1272_v17 = vmul.f32 %v4549_v2, %v5069_v8  ;;  %v4389_v8 = vld [vmem:[%s5473_s4 + $0x30] sm:$0xff]  }
 0x458   : > { %v1135_v56 = vcombine.low %v1085_v51, %v1101_v52  ;;  %v1118_v57 = vrot.slane %v1111_v53, %v5015_v1  ;;  %v1134_v59 = vrot.slane %v1127_v54, %v5015_v1  ;;  %v4395_v52 = vld [vmem:[%s5473_s4] sm:$0xff]  }
 0x459   : > { %v1274_v11 = vpack.c.bf16 %v1272_v17, %v1272_v17 }
 0x45a   : > { %v1119_v58 = vcombine.low %v1110_v55, %v1118_v57  ;;  %v1142_v60 = vrot.slane %v1135_v56, %v5015_v1 }
 0x45c   : > { %v1126_v61 = vrot.slane %v1119_v58, %v5021_v9  ;;  %v1143_v62 = vcombine.low %v1134_v59, %v1142_v60 }
 0x45e   : > { %v1150_v0 = vrot.slane %v1143_v62, %v5021_v9  ;;  %v1154_v4 = vshrl.u32 %v1126_v61, 16 }
 0x460   : > { %v1153_v3 = vpack.i.b16 %v1150_v0, %v1126_v61  ;;  %v1155_v7 = vshrl.u32 %v1150_v0, 16 }
 0x462   : > { %v1280_v13 = vsel %vm1278_vm3, %v1153_v3, 0  ;;  %v1156_v14 = vpack.i.b16 %v1155_v7, %v1154_v4  ;;  %v4396_v7 = vld [vmem:[#allocation5 + $0x70] ss:$8 sps:$4 sm:$0xff]  }
 0x463   : > { %4163 = vmatpush3.bf16.msra.mxu0 %v1280_v13  ;;  %v5156_v13 = vsub.s32 1, %v4991_v44 }
 0x464   : > { %v1326_v18 = vsel %vm1278_vm3, %v1156_v14, 0  ;;  %4174 = vmatprep.subr.bf16.mxu0 %v4768_v5 }
 0x465   : > { %4169 = vmatpush3.bf16.msra.mxu1 %v1326_v18  ;;  %v1509_v14 = vrot.slane %v5004_v47, %v5156_v13 }
 0x466   : > { %4165 = vmatmul.mubr.msk.bf16.vlgmr.msra.gmra.mxu0 %vm1250_vm2, %v1273_v19  ;;  %1727 = vmatprep.subr.bf16.mxu1 %v4398_v10  ;;  %v4435_v10 = vld [vmem:[#allocation7] sm:$0xff]  }
 0x467   : > { %4190 = vmatprep.mubr.msk.bf16.mxu0 %vm4770_vm0, %v4768_v5  ;;  %4175 = vmatpush3.bf16.msra.mxu0 %v4388_v6 }
 0x468   : > { %4171 = vmatmul.mubr.msk.bf16.vlgmr.msra.gmra.mxu1 %vm1250_vm2, %v1274_v11  ;;  %4176 = vmatprep.subr.bf16.mxu0 %v4768_v5 }
 0x469   : > { %1759 = vmatprep.mubr.bf16.mxu1 %v4769_v22  ;;  %1728 = vmatpush1.bf16.msra.mxu1 %v4396_v7  ;;  %v4434_v7 = vld [vmem:[#allocation7 + $0x40] sm:$0xff]  }
 0x46b   : > { %4177 = vmatpush3.bf16.msra.mxu0 %v4389_v8 }
 0x46c   : > { %4178 = vmatprep.subr.bf16.mxu0 %v4768_v5 }
 0x46f   : > { %4179 = vmatpush3.bf16.msra.mxu0 %v4390_v20 }
 0x470   : > { %4180 = vmatprep.subr.bf16.mxu0 %v4768_v5 }
 0x473   : > { %4181 = vmatpush3.bf16.msra.mxu0 %v4391_v21  ;;  %v4401_v21 = vld [vmem:[#allocation5 + $0x64] ss:$8 sps:$4 sm:$0xff]  }
 0x474   : > { %4182 = vmatprep.subr.bf16.mxu0 %v4768_v5  ;;  %1729 = vmatprep.subr.bf16.mxu1 %v4401_v21 }
 0x477   : > { %4183 = vmatpush3.bf16.msra.mxu0 %v4392_v23  ;;  %v4399_v23 = vld [vmem:[#allocation5 + $0x60] ss:$8 sps:$4 sm:$0xff]  }
 0x478   : > { %4184 = vmatprep.subr.bf16.mxu0 %v4768_v5  ;;  %1730 = vmatpush1.bf16.msra.mxu1 %v4399_v23 }
 0x47b   : > { %4185 = vmatpush3.bf16.msra.mxu0 %v4393_v28  ;;  %v4404_v28 = vld [vmem:[#allocation5 + $0x54] ss:$8 sps:$4 sm:$0xff]  }
 0x47c   : > { %4186 = vmatprep.subr.bf16.mxu0 %v4768_v5  ;;  %1731 = vmatprep.subr.bf16.mxu1 %v4404_v28 }
 0x47f   : > { %4187 = vmatpush3.bf16.msra.mxu0 %v4394_v29  ;;  %v4402_v29 = vld [vmem:[#allocation5 + $0x50] ss:$8 sps:$4 sm:$0xff]  }
 0x480   : > { %4188 = vmatprep.subr.bf16.mxu0 %v4768_v5  ;;  %1732 = vmatpush1.bf16.msra.mxu1 %v4402_v29 }
 0x483   : > { %4189 = vmatpush3.bf16.msra.mxu0 %v4395_v52 }
 0x526   : > { %v1316_v15 = vpop.f32.mrf.mxu0 }
 0x527   : > { %v1368_v24 = vcombine.high %v1316_v15, %v4768_v5  ;;  %v1375_v12 = vrot.slane %v1316_v15, %v5015_v1  ;;  %v4407_v15 = vld [vmem:[#allocation5 + $0x44] ss:$8 sps:$4 sm:$0xff]  }
 0x528   : > { %v4166_v50 = vpop.f32.mrf.mxu0  ;;  %v1362_v30 = vpop.f32.mrf.mxu1  ;;  %1733 = vmatprep.subr.bf16.mxu1 %v4407_v15 }
 0x529   : > { %v1383_v16 = vcombine.high %v1362_v30, %v4768_v5  ;;  %v1390_v31 = vrot.slane %v1362_v30, %v5015_v1  ;;  %v1382_v33 = vrot.slane %v1368_v24, %v5015_v1  ;;  %v4405_v24 = vld [vmem:[#allocation5 + $0x40] ss:$8 sps:$4 sm:$0xff]   ;;  %v4410_v50 = vld [vmem:[#allocation5 + $0x34] ss:$8 sps:$4 sm:$0xff]   ;;  %v4408_v30 = vld [vmem:[#allocation5 + $0x30] ss:$8 sps:$4 sm:$0xff]  }
 0x52a   : > { %v1319_v25 = vpop.f32.mrf.mxu0  ;;  %v4172_v32 = vpop.f32.mrf.mxu1  ;;  %1734 = vmatpush1.bf16.msra.mxu1 %v4405_v24 }
 0x52b   : > { %v1397_v26 = vrot.slane %v1383_v16, %v5015_v1  ;;  %v1398_v27 = vcombine.low %v1375_v12, %v1390_v31  ;;  %v1399_v34 = vcombine.high %v1375_v12, %v1390_v31  ;;  %1735 = vmatprep.subr.bf16.mxu1 %v4410_v50  ;;  %v4411_v12 = vld [vmem:[#allocation5 + $0x20] ss:$8 sps:$4 sm:$0xff]   ;;  %v4416_v16 = vld [vmem:[#allocation5 + $0x14] ss:$8 sps:$4 sm:$0xff]   ;;  %v4414_v31 = vld [vmem:[#allocation5 + $0x10] ss:$8 sps:$4 sm:$0xff]  }
 0x52c   : > { %v4167_v35 = vpop.f32.mrf.mxu0  ;;  %v1365_v36 = vpop.f32.mrf.mxu1  ;;  %v4419_v25 = vld [vmem:[#allocation5 + $0x4] ss:$8 sps:$4 sm:$0xff]   ;;  %v4417_v32 = vld [vmem:[#allocation5] ss:$8 sps:$4 sm:$0xff]  }
 0x52d   : > { %v1406_v37 = vrot.slane %v1398_v27, %v5021_v9  ;;  %v1413_v38 = vrot.slane %v1399_v34, %v5021_v9  ;;  %v1414_v39 = vcombine.low %v1382_v33, %v1397_v26  ;;  %v1415_v40 = vcombine.high %v1382_v33, %v1397_v26 }
 0x52e   : > { %v4173_v42 = vpop.f32.mrf.mxu1  ;;  %1736 = vmatpush1.bf16.msra.mxu1 %v4408_v30 }
 0x52f   : > { %v1422_v43 = vrot.slane %v1414_v39, %v5021_v9  ;;  %v1429_v48 = vrot.slane %v1415_v40, %v5021_v9  ;;  %v1434_v49 = vcombine.low %v1406_v37, %v1413_v38  ;;  %v3878_v51 = vcombine.high %v1406_v37, %v1413_v38 }
 0x530   : > { %v1614_v38 = vsub.s32 2, %v4991_v44  ;;  %v1619_v39 = vsub.s32 3, %v4991_v44 }
 0x531   : > { %v1441_v53 = vrot.slane %v1434_v49, %v5015_v1  ;;  %v1449_v54 = vrot.slane %v3878_v51, %v5015_v1  ;;  %v1450_v55 = vcombine.low %v1422_v43, %v1429_v48  ;;  %v3879_v56 = vcombine.high %v1422_v43, %v1429_v48 }
 0x532   : > { %v1615_v42 = vrot.slane %v5004_v47, %v1614_v38  ;;  %v1620_v49 = vrot.slane %v5004_v47, %v1619_v39 }
 0x533   : > { %v1457_v57 = vrot.slane %v1450_v55, %v5015_v1  ;;  %v1465_v58 = vrot.slane %v3879_v56, %v5015_v1  ;;  %v1466_v59 = vcombine.low %v1441_v53, %v1449_v54  ;;  %v4420_v54 = vld [vmem:[#allocation7 + $0x78] sm:$0xff]   ;;  %v4422_v56 = vld [vmem:[#allocation7 + $0x70] sm:$0xff]  }
 0x534   : > { %v4421_v55 = vld [vmem:[#allocation7 + $0x38] sm:$0xff]   ;;  %4058 = vmatprep.subr.bf16.mxu0 %v4420_v54 }
 0x535   : > { %v1474_v60 = vcombine.low %v1457_v57, %v1465_v58  ;;  %v1473_v61 = vrot.slane %v1466_v59, %v5021_v9  ;;  %v4423_v57 = vld [vmem:[#allocation7 + $0x30] sm:$0xff]   ;;  %v4424_v58 = vld [vmem:[#allocation7 + $0x68] sm:$0xff]  }
 0x536   : > { %v4425_v59 = vld [vmem:[#allocation7 + $0x28] sm:$0xff]  }
 0x537   : > { %v1481_v62 = vrot.slane %v1474_v60, %v5021_v9  ;;  %v4426_v60 = vld [vmem:[#allocation7 + $0x60] sm:$0xff]  }
 0x539   : > { %v1483_v63 = vcombine.high %v1473_v61, %v1481_v62  ;;  %v1482_v0 = vcombine.low %v1473_v61, %v1481_v62  ;;  %v4427_v61 = vld [vmem:[#allocation7 + $0x20] sm:$0xff]   ;;  %v4428_v62 = vld [vmem:[#allocation7 + $0x58] sm:$0xff]  }
 0x53b   : > { %1485 = vrot.lane.b32.xlu0 %v1483_v63, %s4771_s13  ;;  %v4429_v63 = vld [vmem:[#allocation7 + $0x18] sm:$0xff]  }
 0x5ad   : > { %v1486_v2 = vpop.permute.xlu0 %1485 }
 0x5ae   : > { %v1488_v3 = vsel %vm1157_vm1, %v1482_v0, %v1486_v2  ;;  %v4430_v0 = vld [vmem:[#allocation7 + $0x50] sm:$0xff]  }
 0x5af   : > { %v1489_v4 = vpack.c.bf16 %v1488_v3, %v1488_v3  ;;  %v4431_v2 = vld [vmem:[#allocation7 + $0x10] sm:$0xff]   ;;  %v4432_v3 = vld [vmem:[#allocation7 + $0x48] sm:$0xff]  }
 0x5b1   : > { %4191 = vmatmul.mubr.bf16.vlgmr.msra.gmra.mxu0 %v1489_v4  ;;  %v4433_v4 = vld [vmem:[#allocation7 + $0x8] sm:$0xff]  }
 0x5b2   : > { %4059 = vmatpush3.bf16.msra.mxu0 %v4421_v55 }
 0x5b3   : > { %4060 = vmatprep.subr.bf16.mxu0 %v4422_v56  ;;  %v4438_v56 = vld [vmem:[#allocation2 + $0x16c] ss:$12 sps:$4 sm:$0xff]  }
 0x5b6   : > { %4061 = vmatpush3.bf16.msra.mxu0 %v4423_v57  ;;  %v4436_v57 = vld [vmem:[#allocation2 + $0x168] ss:$12 sps:$4 sm:$0xff]  }
 0x5b7   : > { %4062 = vmatprep.subr.bf16.mxu0 %v4424_v58  ;;  %v4439_v58 = vld [vmem:[#allocation2 + $0x170] ss:$12 sps:$4 sm:$0xff]  }
 0x5ba   : > { %4063 = vmatpush3.bf16.msra.mxu0 %v4425_v59  ;;  %v4442_v59 = vld [vmem:[#allocation2 + $0x154] ss:$12 sps:$4 sm:$0xff]  }
 0x5bb   : > { %4064 = vmatprep.subr.bf16.mxu0 %v4426_v60  ;;  %v4440_v60 = vld [vmem:[#allocation2 + $0x150] ss:$12 sps:$4 sm:$0xff]  }
 0x5be   : > { %4065 = vmatpush3.bf16.msra.mxu0 %v4427_v61  ;;  %v4443_v61 = vld [vmem:[#allocation2 + $0x158] ss:$12 sps:$4 sm:$0xff]  }
 0x5bf   : > { %4066 = vmatprep.subr.bf16.mxu0 %v4428_v62  ;;  %v4444_v62 = vld [vmem:[#allocation2 + $0x138] ss:$12 sps:$4 sm:$0xff]  }
 0x5c2   : > { %4067 = vmatpush3.bf16.msra.mxu0 %v4429_v63  ;;  %v4447_v63 = vld [vmem:[#allocation2 + $0x140] ss:$12 sps:$4 sm:$0xff]  }
 0x5c3   : > { %4068 = vmatprep.subr.bf16.mxu0 %v4430_v0  ;;  %v4450_v0 = vld [vmem:[#allocation2 + $0x124] ss:$12 sps:$4 sm:$0xff]  }
 0x5c6   : > { %4069 = vmatpush3.bf16.msra.mxu0 %v4431_v2  ;;  %v4448_v2 = vld [vmem:[#allocation2 + $0x120] ss:$12 sps:$4 sm:$0xff]  }
 0x5c7   : > { %4070 = vmatprep.subr.bf16.mxu0 %v4432_v3  ;;  %v4451_v3 = vld [vmem:[#allocation2 + $0x128] ss:$12 sps:$4 sm:$0xff]  }
 0x5ca   : > { %4071 = vmatpush3.bf16.msra.mxu0 %v4433_v4  ;;  %v4454_v4 = vld [vmem:[#allocation2 + $0x10c] ss:$12 sps:$4 sm:$0xff]  }
 0x5cb   : > { %4072 = vmatprep.subr.bf16.mxu0 %v4434_v7  ;;  %v4452_v7 = vld [vmem:[#allocation2 + $0x108] ss:$12 sps:$4 sm:$0xff]  }
 0x5ce   : > { %4073 = vmatpush3.bf16.msra.mxu0 %v4435_v10  ;;  %v4455_v10 = vld [vmem:[#allocation2 + $0x110] ss:$12 sps:$4 sm:$0xff]  }
 0x5cf   : > { %4194 = vmatprep.subr.bf16.mxu0 %v4768_v5 }
 0x671   : > { %v1592_v17 = vpop.f32.mrf.mxu0 }
 0x672   : > { %v1593_v18 = vadd.f32 %v1592_v17, %v1509_v14  ;;  %v5176_v14 = vsub.s32 4, %v4991_v44 }
 0x673   : > { %v4192_v19 = vpop.f32.mrf.mxu0 }
 0x674   : > { %v1598_v11 = vadd.f32 %v1593_v18, %v4983_v41  ;;  %v4413_v41 = vld [vmem:[#allocation5 + $0x24] ss:$8 sps:$4 sm:$0xff]   ;;  %v1642_v17 = vrot.slane %v5004_v47, %v5176_v14  ;;  %v1646_v18 = vrot.slane %v4996_v45, %v5176_v14 }
 0x675   : > { %v1595_v6 = vpop.f32.mrf.mxu0  ;;  %1737 = vmatprep.subr.bf16.mxu1 %v4413_v41 }
 0x676   : > { %1599 = vadd.xlane.f32.xlu1 %v1598_v11  ;;  %v1602_v8 = vmul.f32 %v1598_v11, %v1598_v11  ;;  %1738 = vmatpush1.bf16.msra.mxu1 %v4411_v12 }
 0x677   : > { %v4193_v20 = vpop.f32.mrf.mxu0  ;;  %1739 = vmatprep.subr.bf16.mxu1 %v4416_v16 }
 0x678   : > { %1603 = vadd.xlane.f32.xlu0 %v1602_v8 }
 0x67a   : > { %1740 = vmatpush1.bf16.msra.mxu1 %v4414_v31 }
 0x67b   : > { %1741 = vmatprep.subr.bf16.mxu1 %v4419_v25 }
 0x67e   : > { %1742 = vmatpush1.bf16.msra.mxu1 %v4417_v32 }
 0x67f   : > { %2162 = vmatprep.subr.bf16.mxu1 %v4438_v56 }
 0x6ff   : > { %v1600_v33 = vpop.xlane.xlu1 %1599 }
 0x700   : > { %v1601_v26 = vmul.f32 0.0078125, %v1600_v33 }
 0x701   : > { %v1604_v27 = vpop.xlane.xlu0 %1603 }
 0x702   : > { %v1606_v34 = vmul.f32 %v1601_v26, %v1601_v26  ;;  %v1605_v35 = vmul.f32 0.0078125, %v1604_v27  ;;  %v1608_v40 = vsub.f32 %v1598_v11, %v1601_v26 }
 0x704   : > { %v1607_v36 = vsub.f32 %v1605_v35, %v1606_v34 }
 0x706   : > { %v1609_v37 = vadd.f32 1e-12, %v1607_v36 }
 0x708   : > { %4550 = vrsqrt.f32 %v1609_v37  ;;  %v1822_v37 = vsub.s32 5, %v4991_v44 }
 0x715   : > { %v4551_v43 = vpop.eup %4550 }
 0x716   : > { %v1611_v48 = vmul.f32 %v4551_v43, %v1608_v40 }
 0x718   : > { %v1616_v51 = vmul.f32 %v1615_v42, %v1611_v48  ;;  %v1823_v42 = vrot.slane %v5004_v47, %v1822_v37 }
 0x71a   : > { %v5169_v52 = vadd.f32 %v1620_v49, %v1616_v51 }
 0x71c   : > { %v1622_v53 = vpack.c.bf16 %v5169_v52, %v5169_v52 }
 0x71e   : > { %1760 = vmatmul.mubr.bf16.vlgmr.msra.gmra.mxu1 %v1622_v53 }
 0x71f   : > { %2194 = vmatprep.mubr.bf16.mxu1 %v4769_v22  ;;  %2163 = vmatpush1.bf16.msra.mxu1 %v4436_v57 }
 0x720   : > { %2164 = vmatprep.subr.bf16.mxu1 %v4442_v59 }
 0x723   : > { %2165 = vmatpush1.bf16.msra.mxu1 %v4440_v60 }
 0x7de   : > { %v1761_v19 = vpop.f32.mrf.mxu1 }
 0x7df   : > { %v1762_v11 = vadd.f32 %v1761_v19, %v1642_v17  ;;  %v4458_v17 = vld [vmem:[#allocation2 + $0xf4] ss:$12 sps:$4 sm:$0xff]   ;;  %v4459_v19 = vld [vmem:[#allocation2 + $0xf8] ss:$12 sps:$4 sm:$0xff]  }
 0x7e0   : > { %v1763_v6 = vpop.f32.mrf.mxu1 }
 0x7e1   : > { %v1768_v8 = vmul.f32 %v1762_v11, %v1762_v11  ;;  %v1764_v20 = vadd.f32 %v1763_v6, %v1646_v18  ;;  %v4456_v18 = vld [vmem:[#allocation2 + $0xf0] ss:$12 sps:$4 sm:$0xff]   ;;  %v4460_v6 = vld [vmem:[#allocation2 + $0xd8] ss:$12 sps:$4 sm:$0xff]  }
 0x7e2   : > { %v1765_v21 = vpop.f32.mrf.mxu1 }
 0x7e3   : > { %v1770_v23 = vmul.f32 %v1768_v8, %v1762_v11  ;;  %v1769_v28 = vmul.f32 %v1764_v20, %v1764_v20  ;;  %v4463_v8 = vld [vmem:[#allocation2 + $0xe0] ss:$12 sps:$4 sm:$0xff]  }
 0x7e4   : > { %v1766_v29 = vpop.f32.mrf.mxu1  ;;  %v4464_v21 = vld [vmem:[#allocation2 + $0xc0] ss:$12 sps:$4 sm:$0xff]  }
 0x7e5   : > { %v1772_v15 = vmul.f32 0.044715, %v1770_v23  ;;  %v1771_v24 = vmul.f32 %v1769_v28, %v1764_v20  ;;  %v4467_v23 = vld [vmem:[#allocation2 + $0xc8] ss:$12 sps:$4 sm:$0xff]  }
 0x7e7   : > { %v1774_v50 = vadd.f32 %v1772_v15, %v1762_v11  ;;  %v1773_v30 = vmul.f32 0.044715, %v1771_v24 }
 0x7e9   : > { %v1776_v41 = vmul.f32 0.7978846, %v1774_v50  ;;  %v1775_v12 = vadd.f32 %v1773_v30, %v1764_v20 }
 0x7eb   : > { %4552 = vtanh.f32 %v1776_v41  ;;  %v1777_v16 = vmul.f32 0.7978846, %v1775_v12  ;;  %v1976_v12 = vsub.s32 6, %v4991_v44 }
 0x7ed   : > { %4554 = vtanh.f32 %v1777_v16  ;;  %v1981_v16 = vsub.s32 7, %v4991_v44 }
 0x7f8   : > { %v4553_v31 = vpop.eup %4552 }
 0x7f9   : > { %v1780_v45 = vadd.f32 1.0, %v4553_v31 }
 0x7fa   : > { %v4555_v25 = vpop.eup %4554 }
 0x7fb   : > { %v1781_v32 = vadd.f32 1.0, %v4555_v25  ;;  %v1782_v33 = vmul.f32 0.5, %v1780_v45  ;;  %v1977_v45 = vrot.slane %v5004_v47, %v1976_v12 }
 0x7fd   : > { %v1783_v26 = vmul.f32 0.5, %v1781_v32  ;;  %v1784_v27 = vmul.f32 %v1782_v33, %v1762_v11  ;;  %v4462_v11 = vld [vmem:[#allocation2 + $0xdc] ss:$12 sps:$4 sm:$0xff]   ;;  %v1982_v33 = vrot.slane %v5004_v47, %v1981_v16 }
 0x7fe   : > { %v5228_v47 = vld [vmem:[%s5476_s7 + $0x18] sm:$0xff] }
 0x7ff   : > { %v1785_v34 = vmul.f32 %v1783_v26, %v1764_v20  ;;  %v1786_v36 = vpack.c.bf16 %v1784_v27, %v1784_v27  ;;  %v4466_v20 = vld [vmem:[#allocation2 + $0xc4] ss:$12 sps:$4 sm:$0xff]  }
 0x801   : > { %v1787_v35 = vpack.c.bf16 %v1785_v34, %v1785_v34 }
 0x803   : > { %1952 = vmatprep.mubr.bf16.mxu0 %v1787_v35  ;;  %v5223_v35 = vld [vmem:[%s5476_s7 + $0x20] sm:$0xff] }
 0x804   : > { %1953 = vmatmul.mubr.bf16.vlgmr.msra.gmra.mxu0 %v1786_v36  ;;  %v2029_v36 = vrot.slane %v5223_v35, %v4999_v46 }
 0x805   : > { %4210 = vmatprep.mubr.msk.bf16.mxu0 %vm4770_vm0, %v4768_v5  ;;  %4195 = vmatpush3.bf16.msra.mxu0 %v4439_v58 }
 0x806   : > { %4196 = vmatprep.subr.bf16.mxu0 %v4768_v5 }
 0x809   : > { %4197 = vmatpush3.bf16.msra.mxu0 %v4443_v61 }
 0x80a   : > { %4198 = vmatprep.subr.bf16.mxu0 %v4768_v5 }
 0x80d   : > { %4199 = vmatpush3.bf16.msra.mxu0 %v4447_v63 }
 0x80e   : > { %4200 = vmatprep.subr.bf16.mxu0 %v4768_v5 }
 0x811   : > { %4201 = vmatpush3.bf16.msra.mxu0 %v4451_v3 }
 0x812   : > { %4202 = vmatprep.subr.bf16.mxu0 %v4768_v5 }
 0x815   : > { %4203 = vmatpush3.bf16.msra.mxu0 %v4455_v10 }
 0x816   : > { %4204 = vmatprep.subr.bf16.mxu0 %v4768_v5 }
 0x819   : > { %4205 = vmatpush3.bf16.msra.mxu0 %v4459_v19 }
 0x81a   : > { %4206 = vmatprep.subr.bf16.mxu0 %v4768_v5 }
 0x81d   : > { %4207 = vmatpush3.bf16.msra.mxu0 %v4463_v8 }
 0x81e   : > { %4208 = vmatprep.subr.bf16.mxu0 %v4768_v5 }
 0x821   : > { %4209 = vmatpush3.bf16.msra.mxu0 %v4467_v23 }
 0x822   : > { %4238 = vmatprep.subr.bf16.mxu0 %v4768_v5 }
 0x8c4   : > { %v4074_v40 = vpop.f32.mrf.mxu0 }
 0x8c6   : > { %v4075_v43 = vpop.f32.mrf.mxu0 }
 0x8c7   : > { %v4076_v48 = vadd.f32 %v4075_v43, %v4074_v40  ;;  %v2025_v43 = vrot.slane %v5228_v47, %v4999_v46 }
 0x8c8   : > { %v4077_v49 = vpop.f32.mrf.mxu0 }
 0x8c9   : > { %v1955_v51 = vadd.f32 %v4076_v48, %v1823_v42 }
 0x8ca   : > { %v4078_v53 = vpop.f32.mrf.mxu0 }
 0x8cb   : > { %v5189_v54 = vadd.f32 %v1955_v51, %v5169_v52  ;;  %v4446_v52 = vld [vmem:[#allocation2 + $0x13c] ss:$12 sps:$4 sm:$0xff]  }
 0x8cc   : > { %2166 = vmatprep.subr.bf16.mxu1 %v4446_v52 }
 0x8cd   : > { %1961 = vadd.xlane.f32.xlu1 %v5189_v54  ;;  %v1964_v55 = vmul.f32 %v5189_v54, %v5189_v54  ;;  %2167 = vmatpush1.bf16.msra.mxu1 %v4444_v62 }
 0x8ce   : > { %2168 = vmatprep.subr.bf16.mxu1 %v4450_v0 }
 0x8d1   : > { %1965 = vadd.xlane.f32.xlu1 %v1964_v55  ;;  %2169 = vmatpush1.bf16.msra.mxu1 %v4448_v2 }
 0x8d2   : > { %2170 = vmatprep.subr.bf16.mxu1 %v4454_v4 }
 0x8d5   : > { %2171 = vmatpush1.bf16.msra.mxu1 %v4452_v7 }
 0x8d6   : > { %2172 = vmatprep.subr.bf16.mxu1 %v4458_v17 }
 0x8d9   : > { %2173 = vmatpush1.bf16.msra.mxu1 %v4456_v18 }
 0x8da   : > { %2174 = vmatprep.subr.bf16.mxu1 %v4462_v11 }
 0x8dd   : > { %2175 = vmatpush1.bf16.msra.mxu1 %v4460_v6 }
 0x8de   : > { %2176 = vmatprep.subr.bf16.mxu1 %v4466_v20 }
 0x8e1   : > { %2177 = vmatpush1.bf16.msra.mxu1 %v4464_v21 }
 0x8e2   : > { %4214 = vmatprep.subr.bf16.mxu1 %v4768_v5 }
 0x956   : > { %v1962_v28 = vpop.xlane.xlu1 %1961 }
 0x957   : > { %v1963_v29 = vmul.f32 0.0078125, %v1962_v28 }
 0x959   : > { %v1968_v24 = vmul.f32 %v1963_v29, %v1963_v29  ;;  %v1970_v31 = vsub.f32 %v5189_v54, %v1963_v29 }
 0x95a   : > { %v1966_v15 = vpop.xlane.xlu1 %1965 }
 0x95b   : > { %v1967_v50 = vmul.f32 0.0078125, %v1966_v15 }
 0x95d   : > { %v1969_v30 = vsub.f32 %v1967_v50, %v1968_v24 }
 0x95f   : > { %v1971_v41 = vadd.f32 1e-12, %v1969_v30 }
 0x961   : > { %4556 = vrsqrt.f32 %v1971_v41 }
 0x96e   : > { %v4557_v25 = vpop.eup %4556 }
 0x96f   : > { %v1973_v32 = vmul.f32 %v4557_v25, %v1970_v31 }
 0x971   : > { %v1978_v26 = vmul.f32 %v1977_v45, %v1973_v32 }
 0x973   : > { %v5212_v27 = vadd.f32 %v1982_v33, %v1978_v26 }
 0x975   : > { %v1988_v34 = vpack.c.bf16 %v5212_v27, %v5212_v27 }
 0x977   : > { %2195 = vmatmul.mubr.bf16.vlgmr.msra.gmra.mxu1 %v1988_v34  ;;  %4211 = vmatmul.mubr.bf16.vlgmr.msra.gmra.mxu0 %v1988_v34 }
 0x978   : > { %4216 = vmatprep.mubr.msk.bf16.mxu1 %vm4770_vm0, %v4768_v5  ;;  %4254 = vmatprep.mubr.msk.bf16.mxu0 %vm4770_vm0, %v4768_v5 }
 0xa37   : > { %v2196_v40 = vpop.f32.mrf.mxu1  ;;  %v5232_v42 = vpop.f32.mrf.mxu0 }
 0xa38   : > { %v2197_v55 = vadd.f32 %v2196_v40, %v2025_v43 }
 0xa39   : > { %v2198_v48 = vpop.f32.mrf.mxu1  ;;  %v4212_v49 = vpop.f32.mrf.mxu0 }
 0xa3a   : > { %v2199_v51 = vadd.f32 %v2198_v48, %v2029_v36  ;;  %v2243_v59 = vpack.c.bf16 %v2197_v55, %v2197_v55 }
 0xa3b   : > { %v2200_v53 = vpop.f32.mrf.mxu1  ;;  %v2240_v54 = vpop.f32.mrf.mxu0 }
 0xa3c   : > { %v2382_v56 = vpack.c.bf16 %v2199_v51, %v2199_v51  ;;  %v2253_v60 = vrot.slane %v2243_v59, %v5015_v1 }
 0xa3d   : > { %v2201_v57 = vpop.f32.mrf.mxu1  ;;  %v4213_v58 = vpop.f32.mrf.mxu0 }
 0xa3e   : > { %2384 = vrot.lane.b32.xlu1 %v2382_v56, %s4771_s13  ;;  %v2392_v61 = vrot.slane %v2382_v56, %v5015_v1  ;;  %v2254_v52 = vcombine.high %v2253_v60, %v4769_v22  ;;  %v5243_v63 = vrot.slane %v2253_v60, %v5021_v9 }
 0xa40   : > { %v2393_v62 = vcombine.high %v2392_v61, %v4769_v22  ;;  %v5246_v0 = vrot.slane %v2254_v52, %v5021_v9  ;;  %v2400_v2 = vrot.slane %v2392_v61, %v5021_v9  ;;  %v2269_v4 = vcombine.high %v5243_v63, %v4769_v22 }
 0xa41   : > { %v2300_v8 = vshrl.u32 %v5243_v63, 16 }
 0xa42   : > { %2245 = vrot.lane.b32.xlu1 %v2243_v59, %s4771_s13  ;;  %v2407_v3 = vrot.slane %v2393_v62, %v5021_v9  ;;  %v2270_v10 = vcombine.high %v5246_v0, %v4769_v22  ;;  %v2408_v18 = vcombine.high %v2400_v2, %v4769_v22  ;;  %v2308_v20 = vshrl.u32 %v2269_v4, 16 }
 0xa43   : > { %v2316_v21 = vshrl.u32 %v5246_v0, 16  ;;  %v2439_v50 = vshrl.u32 %v2400_v2, 16 }
 0xa44   : > { %v2409_v19 = vcombine.high %v2407_v3, %v4769_v22  ;;  %v2324_v28 = vshrl.u32 %v2270_v10, 16  ;;  %v2447_v30 = vshrl.u32 %v2408_v18, 16  ;;  %v2455_v41 = vshrl.u32 %v2407_v3, 16 }
 0xa46   : > { %v2463_v45 = vshrl.u32 %v2409_v19, 16 }
 0xab0   : > { %v2385_v7 = vpop.permute.xlu1 %2384 }
 0xab1   : > { %v2417_v17 = vrot.slane %v2385_v7, %v5015_v1 }
 0xab3   : > { %v2418_v11 = vcombine.high %v2417_v17, %v4769_v22  ;;  %v2425_v6 = vrot.slane %v2417_v17, %v5021_v9 }
 0xab4   : > { %v2246_v23 = vpop.permute.xlu1 %2245 }
 0xab5   : > { %v2432_v29 = vrot.slane %v2418_v11, %v5021_v9  ;;  %v2433_v15 = vcombine.high %v2425_v6, %v4769_v22  ;;  %v2440_v24 = vshrl.u32 %v2425_v6, 16  ;;  %v2278_v31 = vrot.slane %v2246_v23, %v5015_v1 }
 0xab6   : > { %v2437_v32 = vpack.i.b16 %v2425_v6, %v2400_v2 }
 0xab7   : > { %v2434_v25 = vcombine.high %v2432_v29, %v4769_v22  ;;  %v2448_v33 = vshrl.u32 %v2433_v15, 16  ;;  %v2453_v26 = vpack.i.b16 %v2432_v29, %v2407_v3  ;;  %v2456_v34 = vshrl.u32 %v2432_v29, 16 }
 0xab8   : > { %v2279_v36 = vcombine.high %v2278_v31, %v4769_v22  ;;  %v2286_v40 = vrot.slane %v2278_v31, %v5021_v9  ;;  %v2441_v43 = vpack.i.b16 %v2440_v24, %v2439_v50  ;;  %v2445_v48 = vpack.i.b16 %v2433_v15, %v2408_v18 }
 0xab9   : > { %v2461_v49 = vpack.i.b16 %v2434_v25, %v2409_v19  ;;  %v2464_v51 = vshrl.u32 %v2434_v25, 16  ;;  %v2457_v53 = vpack.i.b16 %v2456_v34, %v2455_v41  ;;  %v2467_v54 = vcombine.low %v2437_v32, %v2453_v26 }
 0xaba   : > { %v2293_v55 = vrot.slane %v2279_v36, %v5021_v9  ;;  %v2294_v56 = vcombine.high %v2286_v40, %v4769_v22  ;;  %v2449_v57 = vpack.i.b16 %v2448_v33, %v2447_v30  ;;  %v2301_v60 = vshrl.u32 %v2286_v40, 16 }
 0xabb   : > { %v2465_v58 = vpack.i.b16 %v2464_v51, %v2463_v45  ;;  %v2475_v59 = vcombine.low %v2445_v48, %v2461_v49  ;;  %v2474_v61 = vrot.slane %v2467_v54, %v5015_v1  ;;  %v2491_v52 = vcombine.low %v2441_v43, %v2457_v53 }
 0xabc   : > { %v2295_v62 = vcombine.high %v2293_v55, %v4769_v22  ;;  %v2298_v2 = vpack.i.b16 %v2286_v40, %v5243_v63  ;;  %v2306_v7 = vpack.i.b16 %v2294_v56, %v2269_v4  ;;  %v2309_v17 = vshrl.u32 %v2294_v56, 16 }
 0xabd   : > { %v2499_v3 = vcombine.low %v2449_v57, %v2465_v58  ;;  %v2314_v18 = vpack.i.b16 %v2293_v55, %v5246_v0  ;;  %v2317_v19 = vshrl.u32 %v2293_v55, 16  ;;  %v2482_v23 = vrot.slane %v2475_v59, %v5015_v1 }
 0xabe   : > { %v2322_v11 = vpack.i.b16 %v2295_v62, %v2270_v10  ;;  %v2325_v6 = vshrl.u32 %v2295_v62, 16  ;;  %v2302_v29 = vpack.i.b16 %v2301_v60, %v2300_v8  ;;  %v2310_v15 = vpack.i.b16 %v2309_v17, %v2308_v20 }
 0xabf   : > { %v2498_v24 = vrot.slane %v2491_v52, %v5015_v1  ;;  %v2506_v50 = vrot.slane %v2499_v3, %v5015_v1  ;;  %v2318_v30 = vpack.i.b16 %v2317_v19, %v2316_v21  ;;  %v2483_v63 = vcombine.low %v2474_v61, %v2482_v23 }
 0xac0   : > { %v2326_v41 = vpack.i.b16 %v2325_v6, %v2324_v28  ;;  %v2336_v31 = vcombine.low %v2306_v7, %v2322_v11  ;;  %v2328_v45 = vcombine.low %v2298_v2, %v2314_v18 }
 0xac1   : > { %v2507_v4 = vcombine.low %v2498_v24, %v2506_v50  ;;  %v2352_v25 = vcombine.low %v2302_v29, %v2318_v30  ;;  %v2490_v10 = vrot.slane %v2483_v63, %v5021_v9  ;;  %v3922_v29 = vld [vmem:[%s5476_s7 + $0x28] sm:$0xff] }
 0xac2   : > { %v2360_v32 = vcombine.low %v2310_v15, %v2326_v41  ;;  %v2343_v0 = vrot.slane %v2336_v31, %v5015_v1  ;;  %v2335_v26 = vrot.slane %v2328_v45, %v5015_v1  ;;  %v2033_v15 = vrot.slane %v3922_v29, %v4999_v46 }
 0xac3   : > { %v2514_v33 = vrot.slane %v2507_v4, %v5021_v9  ;;  %v2359_v8 = vrot.slane %v2352_v25, %v5015_v1  ;;  %v2518_v48 = vshrl.u32 %v2490_v10, 16 }
 0xac4   : > { %v2367_v20 = vrot.slane %v2360_v32, %v5015_v1  ;;  %v2344_v34 = vcombine.low %v2335_v26, %v2343_v0  ;;  %v2238_v24 = vadd.f32 %v5232_v42, %v2033_v15 }
 0xac5   : > { %v2517_v21 = vpack.i.b16 %v2514_v33, %v2490_v10  ;;  %v2519_v40 = vshrl.u32 %v2514_v33, 16 }
 0xac6   : > { %v2368_v28 = vcombine.low %v2359_v8, %v2367_v20  ;;  %v2351_v49 = vrot.slane %v2344_v34, %v5021_v9  ;;  %v2521_v50 = vpack.c.bf16 %v2238_v24, %v2238_v24 }
 0xac7   : > { %v2664_v36 = vsel %vm1157_vm1, %v2517_v21, 0  ;;  %v2520_v51 = vpack.i.b16 %v2519_v40, %v2518_v48 }
 0xac8   : > { %4215 = vmatpush3.bf16.xpose.msra.mxu1 %v2664_v36  ;;  %v2375_v43 = vrot.slane %v2368_v28, %v5021_v9  ;;  %v2379_v56 = vshrl.u32 %v2351_v49, 16  ;;  %v2531_v4 = vrot.slane %v2521_v50, %v5015_v1 }
 0xac9   : > { %4220 = vmatprep.subr.bf16.mxu1 %v4768_v5  ;;  %v2710_v54 = vsel %vm1157_vm1, %v2520_v51, 0 }
 0xaca   : > { %v2378_v53 = vpack.i.b16 %v2375_v43, %v2351_v49  ;;  %v2380_v55 = vshrl.u32 %v2375_v43, 16  ;;  %v2532_v32 = vcombine.high %v2531_v4, %v4769_v22  ;;  %v2539_v42 = vrot.slane %v2531_v4, %v5021_v9 }
 0xacc   : > { %v2381_v57 = vpack.i.b16 %v2380_v55, %v2379_v56  ;;  %v2546_v10 = vrot.slane %v2532_v32, %v5021_v9  ;;  %v2547_v8 = vcombine.high %v2539_v42, %v4769_v22  ;;  %v2578_v40 = vshrl.u32 %v2539_v42, 16 }
 0xace   : > { %v2548_v21 = vcombine.high %v2546_v10, %v4769_v22  ;;  %v2586_v43 = vshrl.u32 %v2547_v8, 16  ;;  %v2594_v51 = vshrl.u32 %v2546_v10, 16 }
 0xacf   : > { %4217 = vmatmul.mubr.msk.bf16.vlgmr.msra.gmra.mxu1 %vm1157_vm1, %v2378_v53 }
 0xad0   : > { %4221 = vmatpush3.bf16.xpose.msra.mxu1 %v2710_v54  ;;  %4222 = vmatprep.mubr.msk.bf16.mxu1 %vm4770_vm0, %v4768_v5  ;;  %v2602_v56 = vshrl.u32 %v2548_v21, 16 }
 0xad1   : > { %4226 = vmatprep.subr.bf16.mxu1 %v4768_v5 }
 0xad7   : > { %4223 = vmatmul.mubr.msk.bf16.vlgmr.msra.gmra.mxu1 %vm1157_vm1, %v2381_v57 }
 0xad8   : > { %4228 = vmatprep.mubr.msk.bf16.mxu1 %vm4770_vm0, %v4768_v5 }
 0xb8f   : > { %v2700_v58 = vpop.f32.mrf.mxu1 }
 0xb90   : > { %v2752_v59 = vsel %vm1250_vm2, %v2700_v58, -inf }
 0xb91   : > { %2753 = vmax.xlane.f32.xlu0 %v2752_v59  ;;  %v4218_v60 = vpop.f32.mrf.mxu1 }
 0xb93   : > { %v2703_v61 = vpop.f32.mrf.mxu1 }
 0xb95   : > { %v4219_v52 = vpop.f32.mrf.mxu1 }
 0xb97   : > { %v2746_v62 = vpop.f32.mrf.mxu1 }
 0xb98   : > { %v2755_v2 = vsel %vm1250_vm2, %v2746_v62, -inf }
 0xb99   : > { %2756 = vmax.xlane.f32.xlu1 %v2755_v2  ;;  %v4224_v3 = vpop.f32.mrf.mxu1 }
 0xb9b   : > { %v2749_v7 = vpop.f32.mrf.mxu1 }
 0xb9d   : > { %v4225_v17 = vpop.f32.mrf.mxu1 }
 0xc1a   : > { %v2754_v18 = vpop.xlane.xlu0 %2753 }
 0xc1b   : > { %v2758_v19 = vsub.f32 %v2700_v58, %v2754_v18 }
 0xc1d   : > { %v2760_v11 = vmul.f32 1.442695, %v2758_v19 }
 0xc1f   : > { %4558 = vpow2.f32 %v2760_v11 }
 0xc22   : > { %v2757_v30 = vpop.xlane.xlu1 %2756 }
 0xc23   : > { %v2759_v41 = vsub.f32 %v2746_v62, %v2757_v30 }
 0xc25   : > { %v2762_v31 = vmul.f32 1.442695, %v2759_v41 }
 0xc27   : > { %4560 = vpow2.f32 %v2762_v31 }
 0xc2c   : > { %v4559_v6 = vpop.eup %4558 }
 0xc2d   : > { %v2764_v23 = vsel %vm1250_vm2, %v4559_v6, 0.0 }
 0xc2e   : > { %2765 = vadd.xlane.f32.xlu0 %v2764_v23 }
 0xc34   : > { %v5303_v63 = vpop.eup %4560 }
 0xc35   : > { %v2767_v45 = vsel %vm1250_vm2, %v5303_v63, 0.0 }
 0xc44   : > { %2523 = vrot.lane.b32.xlu0 %v2521_v50, %s4771_s13 }
 0xc63   : > { %2768 = vadd.xlane.f32.xlu0 %v2767_v45 }
 0xcb7   : > { %v2766_v25 = vpop.xlane.xlu0 %2765 }
 0xcb8   : > { %4562 = vrcp.f32 %v2766_v25 }
 0xcbb   : > { %v2524_v0 = vpop.permute.xlu0 %2523 }
 0xcbc   : > { %v2556_v33 = vrot.slane %v2524_v0, %v5015_v1 }
 0xcbe   : > { %v2557_v20 = vcombine.high %v2556_v33, %v4769_v22  ;;  %v2564_v26 = vrot.slane %v2556_v33, %v5021_v9 }
 0xcc0   : > { %v2571_v28 = vrot.slane %v2557_v20, %v5021_v9  ;;  %v2572_v34 = vcombine.high %v2564_v26, %v4769_v22  ;;  %v2579_v36 = vshrl.u32 %v2564_v26, 16  ;;  %v2576_v53 = vpack.i.b16 %v2564_v26, %v2539_v42  ;;  %v4468_v20 = vld [vmem:[%s5473_s4 + $0x78] sm:$0xff]   ;;  %v4469_v26 = vld [vmem:[%s5473_s4 + $0x70] sm:$0xff]  }
 0xcc1   : > { %4239 = vmatpush3.bf16.msra.mxu0 %v4468_v20  ;;  %v4478_v20 = vld [vmem:[#allocation5 + $0xf4] ss:$8 sps:$4 sm:$0xff]  }
 0xcc2   : > { %v2573_v48 = vcombine.high %v2571_v28, %v4769_v22  ;;  %v2587_v49 = vshrl.u32 %v2572_v34, 16  ;;  %v2592_v54 = vpack.i.b16 %v2571_v28, %v2546_v10  ;;  %v2595_v55 = vshrl.u32 %v2571_v28, 16  ;;  %4240 = vmatprep.subr.bf16.mxu0 %v4768_v5  ;;  %v4472_v28 = vld [vmem:[%s5473_s4 + $0x58] sm:$0xff]  }
 0xcc3   : > { %v2584_v57 = vpack.i.b16 %v2572_v34, %v2547_v8  ;;  %v2580_v60 = vpack.i.b16 %v2579_v36, %v2578_v40  ;;  %v4473_v34 = vld [vmem:[%s5473_s4 + $0x50] sm:$0xff]   ;;  %v4474_v36 = vld [vmem:[%s5473_s4 + $0x48] sm:$0xff]  }
 0xcc4   : > { %v2600_v58 = vpack.i.b16 %v2573_v48, %v2548_v21  ;;  %v2603_v59 = vshrl.u32 %v2573_v48, 16  ;;  %v2596_v61 = vpack.i.b16 %v2595_v55, %v2594_v51  ;;  %v2606_v52 = vcombine.low %v2576_v53, %v2592_v54  ;;  %v4471_v21 = vld [vmem:[%s5473_s4 + $0x60] sm:$0xff]  }
 0xcc5   : > { %v2588_v62 = vpack.i.b16 %v2587_v49, %v2586_v43  ;;  %v4563_v50 = vpop.eup %4562  ;;  %4241 = vmatpush3.bf16.msra.mxu0 %v4469_v26 }
 0xcc6   : > { %v2604_v2 = vpack.i.b16 %v2603_v59, %v2602_v56  ;;  %v2614_v3 = vcombine.low %v2584_v57, %v2600_v58  ;;  %v2630_v7 = vcombine.low %v2580_v60, %v2596_v61  ;;  %v2613_v17 = vrot.slane %v2606_v52, %v5015_v1  ;;  %4242 = vmatprep.subr.bf16.mxu0 %v4768_v5 }
 0xcc7   : > { %v2772_v31 = vmul.f32 %v4563_v50, %v4559_v6 }
 0xcc8   : > { %v2638_v18 = vcombine.low %v2588_v62, %v2604_v2  ;;  %v2621_v19 = vrot.slane %v2614_v3, %v5015_v1  ;;  %v2637_v23 = vrot.slane %v2630_v7, %v5015_v1 }
 0xcc9   : > { %v2774_v42 = vpack.c.bf16 %v2772_v31, %v2772_v31 }
 0xcca   : > { %v2622_v11 = vcombine.low %v2613_v17, %v2621_v19  ;;  %v2645_v29 = vrot.slane %v2638_v18, %v5015_v1 }
 0xccc   : > { %v2629_v15 = vrot.slane %v2622_v11, %v5021_v9  ;;  %v2646_v24 = vcombine.low %v2637_v23, %v2645_v29  ;;  %v4475_v29 = vld [vmem:[%s5473_s4 + $0x40] sm:$0xff]  }
 0xcce   : > { %v2653_v30 = vrot.slane %v2646_v24, %v5021_v9  ;;  %v2657_v45 = vshrl.u32 %v2629_v15, 16 }
 0xcd0   : > { %v2656_v41 = vpack.i.b16 %v2653_v30, %v2629_v15  ;;  %v2658_v4 = vshrl.u32 %v2653_v30, 16 }
 0xcd2   : > { %v2780_v25 = vsel %vm1278_vm3, %v2656_v41, 0  ;;  %v2659_v32 = vpack.i.b16 %v2658_v4, %v2657_v45 }
 0xcd3   : > { %4227 = vmatpush3.bf16.msra.mxu1 %v2780_v25 }
 0xcd4   : > { %4232 = vmatprep.subr.bf16.mxu1 %v4768_v5  ;;  %v2826_v0 = vsel %vm1278_vm3, %v2659_v32, 0 }
 0xcd6   : > { %4229 = vmatmul.mubr.msk.bf16.vlgmr.msra.gmra.mxu1 %vm1250_vm2, %v2774_v42 }
 0xcd7   : > { %4233 = vmatpush3.bf16.msra.mxu1 %v2826_v0  ;;  %4234 = vmatprep.mubr.msk.bf16.mxu1 %vm4770_vm0, %v4768_v5 }
 0xcd8   : > { %3229 = vmatprep.subr.bf16.mxu1 %v4478_v20  ;;  %v3487_v20 = vld [vmem:[%s454_s12] sm:$0x1]  ;;  %s3711_s12 = scalar_lea.sflag [#allocation4], %s445_s30 }
 0xcec   : > { %v2769_v10 = vpop.xlane.xlu0 %2768 }
 0xced   : > { %4564 = vrcp.f32 %v2769_v10 }
 0xcfa   : > { %v4565_v6 = vpop.eup %4564 }
 0xcfb   : > { %v2773_v33 = vmul.f32 %v4565_v6, %v5303_v63  ;;  %v4470_v63 = vld [vmem:[%s5473_s4 + $0x68] sm:$0xff]  }
 0xcfc   : > { %4243 = vmatpush3.bf16.msra.mxu0 %v4470_v63 }
 0xcfd   : > { %v2775_v8 = vpack.c.bf16 %v2773_v33, %v2773_v33  ;;  %4244 = vmatprep.subr.bf16.mxu0 %v4768_v5 }
 0xcff   : > { %4235 = vmatmul.mubr.msk.bf16.vlgmr.msra.gmra.mxu1 %vm1250_vm2, %v2775_v8  ;;  %v4476_v8 = vld [vmem:[#allocation5 + $0xf0] ss:$8 sps:$4 sm:$0xff]  }
 0xd00   : > { %3261 = vmatprep.mubr.bf16.mxu1 %v4769_v22  ;;  %4245 = vmatpush3.bf16.msra.mxu0 %v4471_v21 }
 0xd01   : > { %4246 = vmatprep.subr.bf16.mxu0 %v4768_v5  ;;  %3230 = vmatpush1.bf16.msra.mxu1 %v4476_v8  ;;  %v4515_v8 = vld [vmem:[#allocation7 + $0x80] sm:$0xff]  }
 0xd04   : > { %4247 = vmatpush3.bf16.msra.mxu0 %v4472_v28 }
 0xd05   : > { %4248 = vmatprep.subr.bf16.mxu0 %v4768_v5 }
 0xd08   : > { %4249 = vmatpush3.bf16.msra.mxu0 %v4473_v34 }
 0xd09   : > { %4250 = vmatprep.subr.bf16.mxu0 %v4768_v5 }
 0xd0c   : > { %4251 = vmatpush3.bf16.msra.mxu0 %v4474_v36 }
 0xd0d   : > { %4252 = vmatprep.subr.bf16.mxu0 %v4768_v5 }
 0xd10   : > { %4253 = vmatpush3.bf16.msra.mxu0 %v4475_v29  ;;  %v3121_v29 = vrot.slane %v5228_v47, %v1619_v39  ;;  %v4505_v39 = vld [vmem:[#allocation7 + $0xa8] sm:$0xff]  }
 0xd96   : > { %v2816_v40 = vpop.f32.mrf.mxu1 }
 0xd97   : > { %v2868_v51 = vcombine.high %v2816_v40, %v4768_v5  ;;  %v2875_v54 = vrot.slane %v2816_v40, %v5015_v1  ;;  %v4481_v40 = vld [vmem:[#allocation5 + $0xe4] ss:$8 sps:$4 sm:$0xff]  }
 0xd98   : > { %v4230_v43 = vpop.f32.mrf.mxu1  ;;  %3231 = vmatprep.subr.bf16.mxu1 %v4481_v40 }
 0xd99   : > { %v2882_v58 = vrot.slane %v2868_v51, %v5015_v1  ;;  %v4479_v43 = vld [vmem:[#allocation5 + $0xe0] ss:$8 sps:$4 sm:$0xff]   ;;  %v4487_v51 = vld [vmem:[#allocation5 + $0xc4] ss:$8 sps:$4 sm:$0xff]  }
 0xd9a   : > { %v2819_v48 = vpop.f32.mrf.mxu1  ;;  %3232 = vmatpush1.bf16.msra.mxu1 %v4479_v43 }
 0xd9b   : > { %v4484_v48 = vld [vmem:[#allocation5 + $0xd4] ss:$8 sps:$4 sm:$0xff]  }
 0xd9c   : > { %v4231_v49 = vpop.f32.mrf.mxu1  ;;  %3233 = vmatprep.subr.bf16.mxu1 %v4484_v48 }
 0xd9d   : > { %v4482_v49 = vld [vmem:[#allocation5 + $0xd0] ss:$8 sps:$4 sm:$0xff]  }
 0xd9e   : > { %3234 = vmatpush1.bf16.msra.mxu1 %v4482_v49 }
 0xd9f   : > { %3235 = vmatprep.subr.bf16.mxu1 %v4487_v51 }
 0xdbf   : > { %v2862_v53 = vpop.f32.mrf.mxu1 }
 0xdc0   : > { %v2883_v55 = vcombine.high %v2862_v53, %v4768_v5  ;;  %v2890_v56 = vrot.slane %v2862_v53, %v5015_v1  ;;  %v4485_v53 = vld [vmem:[#allocation5 + $0xc0] ss:$8 sps:$4 sm:$0xff]  }
 0xdc1   : > { %v4236_v57 = vpop.f32.mrf.mxu1  ;;  %3236 = vmatpush1.bf16.msra.mxu1 %v4485_v53 }
 0xdc2   : > { %v2897_v59 = vrot.slane %v2883_v55, %v5015_v1  ;;  %v2898_v60 = vcombine.low %v2875_v54, %v2890_v56  ;;  %v2899_v61 = vcombine.high %v2875_v54, %v2890_v56  ;;  %v4490_v54 = vld [vmem:[#allocation5 + $0xb4] ss:$8 sps:$4 sm:$0xff]   ;;  %v4488_v55 = vld [vmem:[#allocation5 + $0xb0] ss:$8 sps:$4 sm:$0xff]   ;;  %v4491_v56 = vld [vmem:[#allocation5 + $0xa0] ss:$8 sps:$4 sm:$0xff]  }
 0xdc3   : > { %v2865_v52 = vpop.f32.mrf.mxu1  ;;  %3237 = vmatprep.subr.bf16.mxu1 %v4490_v54  ;;  %v4496_v57 = vld [vmem:[#allocation5 + $0x94] ss:$8 sps:$4 sm:$0xff]  }
 0xdc4   : > { %v2906_v62 = vrot.slane %v2898_v60, %v5021_v9  ;;  %v2913_v2 = vrot.slane %v2899_v61, %v5021_v9  ;;  %v2914_v3 = vcombine.low %v2882_v58, %v2897_v59  ;;  %v2915_v7 = vcombine.high %v2882_v58, %v2897_v59  ;;  %v4494_v58 = vld [vmem:[#allocation5 + $0x90] ss:$8 sps:$4 sm:$0xff]   ;;  %v4499_v59 = vld [vmem:[#allocation5 + $0x84] ss:$8 sps:$4 sm:$0xff]   ;;  %v4497_v60 = vld [vmem:[#allocation5 + $0x80] ss:$8 sps:$4 sm:$0xff]  }
 0xdc5   : > { %v4237_v17 = vpop.f32.mrf.mxu1  ;;  %3238 = vmatpush1.bf16.msra.mxu1 %v4488_v55 }
 0xdc6   : > { %v2922_v18 = vrot.slane %v2914_v3, %v5021_v9  ;;  %v2929_v19 = vrot.slane %v2915_v7, %v5021_v9  ;;  %v2934_v11 = vcombine.low %v2906_v62, %v2913_v2  ;;  %v3951_v23 = vcombine.high %v2906_v62, %v2913_v2 }
 0xdc8   : > { %v2941_v15 = vrot.slane %v2934_v11, %v5015_v1  ;;  %v2949_v24 = vrot.slane %v3951_v23, %v5015_v1  ;;  %v2950_v50 = vcombine.low %v2922_v18, %v2929_v19  ;;  %v3952_v30 = vcombine.high %v2922_v18, %v2929_v19 }
 0xdc9   : > { %v3116_v19 = vrot.slane %v5228_v47, %v1614_v38  ;;  %v4502_v38 = vld [vmem:[#allocation7 + $0xf0] sm:$0xff]  }
 0xdca   : > { %v2957_v41 = vrot.slane %v2950_v50, %v5015_v1  ;;  %v2965_v31 = vrot.slane %v3952_v30, %v5015_v1  ;;  %v2966_v45 = vcombine.low %v2941_v15, %v2949_v24  ;;  %v3010_v1 = vrot.slane %v5228_v47, %v5156_v13  ;;  %v4500_v30 = vld [vmem:[#allocation7 + $0xf8] sm:$0xff]  }
 0xdcb   : > { %4106 = vmatprep.subr.bf16.mxu0 %v4500_v30 }
 0xdcc   : > { %v2974_v4 = vcombine.low %v2957_v41, %v2965_v31  ;;  %v2973_v25 = vrot.slane %v2966_v45, %v5021_v9  ;;  %v4501_v41 = vld [vmem:[#allocation7 + $0xb8] sm:$0xff]   ;;  %v4503_v31 = vld [vmem:[#allocation7 + $0xb0] sm:$0xff]   ;;  %v4504_v45 = vld [vmem:[#allocation7 + $0xe8] sm:$0xff]  }
 0xdce   : > { %v2981_v32 = vrot.slane %v2974_v4, %v5021_v9  ;;  %v4506_v4 = vld [vmem:[#allocation7 + $0xe0] sm:$0xff]  }
 0xdd0   : > { %v2983_v42 = vcombine.high %v2973_v25, %v2981_v32  ;;  %v2982_v0 = vcombine.low %v2973_v25, %v2981_v32  ;;  %v4507_v25 = vld [vmem:[#allocation7 + $0xa0] sm:$0xff]   ;;  %v4508_v32 = vld [vmem:[#allocation7 + $0xd8] sm:$0xff]  }
 0xdd2   : > { %2985 = vrot.lane.b32.xlu1 %v2983_v42, %s4771_s13  ;;  %v4509_v42 = vld [vmem:[#allocation7 + $0x98] sm:$0xff]  }
 0xe44   : > { %v2986_v10 = vpop.permute.xlu1 %2985 }
 0xe45   : > { %v2988_v6 = vsel %vm1157_vm1, %v2982_v0, %v2986_v10  ;;  %v4511_v0 = vld [vmem:[#allocation7 + $0x90] sm:$0xff]   ;;  %v4512_v10 = vld [vmem:[#allocation7 + $0xc8] sm:$0xff]  }
 0xe46   : > { %v2989_v33 = vpack.c.bf16 %v2988_v6, %v2988_v6  ;;  %v4513_v6 = vld [vmem:[#allocation7 + $0x88] sm:$0xff]  }
 0xe48   : > { %4255 = vmatmul.mubr.bf16.vlgmr.msra.gmra.mxu0 %v2989_v33  ;;  %v4514_v33 = vld [vmem:[#allocation7 + $0xc0] sm:$0xff]  }
 0xe49   : > { %4107 = vmatpush3.bf16.msra.mxu0 %v4501_v41  ;;  %v4516_v41 = vld [vmem:[#allocation8 + $0x70] ss:$8 sps:$4 sm:$0xff]  }
 0xe4a   : > { %4108 = vmatprep.subr.bf16.mxu0 %v4502_v38  ;;  %v4518_v38 = vld [vmem:[#allocation8 + $0x74] ss:$8 sps:$4 sm:$0xff]  }
 0xe4d   : > { %4109 = vmatpush3.bf16.msra.mxu0 %v4503_v31  ;;  %v4521_v31 = vld [vmem:[#allocation8 + $0x64] ss:$8 sps:$4 sm:$0xff]  }
 0xe4e   : > { %4110 = vmatprep.subr.bf16.mxu0 %v4504_v45  ;;  %v4519_v45 = vld [vmem:[#allocation8 + $0x60] ss:$8 sps:$4 sm:$0xff]  }
 0xe51   : > { %4111 = vmatpush3.bf16.msra.mxu0 %v4505_v39  ;;  %v4522_v39 = vld [vmem:[#allocation8 + $0x50] ss:$8 sps:$4 sm:$0xff]  }
 0xe52   : > { %4112 = vmatprep.subr.bf16.mxu0 %v4506_v4  ;;  %v4527_v4 = vld [vmem:[#allocation8 + $0x44] ss:$8 sps:$4 sm:$0xff]  }
 0xe55   : > { %4113 = vmatpush3.bf16.msra.mxu0 %v4507_v25  ;;  %v4525_v25 = vld [vmem:[#allocation8 + $0x40] ss:$8 sps:$4 sm:$0xff]  }
 0xe56   : > { %4114 = vmatprep.subr.bf16.mxu0 %v4508_v32  ;;  %v4530_v32 = vld [vmem:[#allocation8 + $0x34] ss:$8 sps:$4 sm:$0xff]  }
 0xe59   : > { %4115 = vmatpush3.bf16.msra.mxu0 %v4509_v42  ;;  %v4533_v42 = vld [vmem:[#allocation8 + $0x24] ss:$8 sps:$4 sm:$0xff]  }
 0xf08   : > { %v3093_v26 = vpop.f32.mrf.mxu0 }
 0xf09   : > { %v3094_v63 = vadd.f32 %v3093_v26, %v3010_v1  ;;  %v3489_v1 = vld [vmem:[%s5477_s8] sm:$0xf]  ;;  %v3488_v26 = vpack.c.bf16 %v3487_v20, %v3487_v20 }
 0xf0a   : > { %v4256_v21 = vpop.f32.mrf.mxu0 }
 0xf0b   : > { %v3099_v9 = vadd.f32 %v3094_v63, %v5212_v27  ;;  %v4493_v27 = vld [vmem:[#allocation5 + $0xa4] ss:$8 sps:$4 sm:$0xff]   ;;  %v3494_v63 = vsel %vm1278_vm3, %v3489_v1, 0  ;;  %v3144_v21 = vrot.slane %v5228_v47, %v5176_v14 }
 0xf0c   : > { %v3096_v28 = vpop.f32.mrf.mxu0  ;;  %3239 = vmatprep.subr.bf16.mxu1 %v4493_v27  ;;  %v4539_v1 = vld [vmem:[#allocation8 + $0x4] ss:$8 sps:$4 sm:$0xff]  }
 0xf0d   : > { %3100 = vadd.xlane.f32.xlu1 %v3099_v9  ;;  %v3103_v34 = vmul.f32 %v3099_v9, %v3099_v9  ;;  %3240 = vmatpush1.bf16.msra.mxu1 %v4491_v56 }
 0xf0e   : > { %v4257_v36 = vpop.f32.mrf.mxu0  ;;  %3241 = vmatprep.subr.bf16.mxu1 %v4496_v57 }
 0xf0f   : > { %3104 = vadd.xlane.f32.xlu0 %v3103_v34 }
 0xf11   : > { %3242 = vmatpush1.bf16.msra.mxu1 %v4494_v58 }
 0xf12   : > { %3243 = vmatprep.subr.bf16.mxu1 %v4499_v59 }
 0xf15   : > { %3244 = vmatpush1.bf16.msra.mxu1 %v4497_v60 }
 0xf16   : > { %4258 = vmatprep.subr.bf16.mxu1 %v4768_v5 }
 0xf96   : > { %v3101_v61 = vpop.xlane.xlu1 %3100 }
 0xf97   : > { %v3102_v52 = vmul.f32 0.0078125, %v3101_v61 }
 0xf98   : > { %v3105_v62 = vpop.xlane.xlu0 %3104 }
 0xf99   : > { %v3107_v2 = vmul.f32 %v3102_v52, %v3102_v52  ;;  %v3106_v3 = vmul.f32 0.0078125, %v3105_v62  ;;  %v3109_v18 = vsub.f32 %v3099_v9, %v3102_v52  ;;  %v3148_v9 = vrot.slane %v5223_v35, %v5176_v14 }
 0xf9b   : > { %v3108_v7 = vsub.f32 %v3106_v3, %v3107_v2 }
 0xf9d   : > { %v3110_v17 = vadd.f32 1e-12, %v3108_v7 }
 0xf9f   : > { %4566 = vrsqrt.f32 %v3110_v17 }
 0xfac   : > { %v4567_v11 = vpop.eup %4566 }
 0xfad   : > { %v3112_v23 = vmul.f32 %v4567_v11, %v3109_v18  ;;  %v3326_v18 = vrot.slane %v5228_v47, %v1822_v37  ;;  %v4524_v37 = vld [vmem:[#allocation8 + $0x54] ss:$8 sps:$4 sm:$0xff]  }
 0xfaf   : > { %v3117_v15 = vmul.f32 %v3116_v19, %v3112_v23 }
 0xfb1   : > { %v5393_v24 = vadd.f32 %v3121_v29, %v3117_v15 }
 0xfb3   : > { %v3123_v50 = vpack.c.bf16 %v5393_v24, %v5393_v24 }
 0xfb5   : > { %3262 = vmatmul.mubr.bf16.vlgmr.msra.gmra.mxu1 %v3123_v50 }
 0xfb6   : > { %4260 = vmatprep.mubr.msk.bf16.mxu1 %vm4770_vm0, %v4768_v5  ;;  %v4510_v5 = vld [vmem:[#allocation7 + $0xd0] sm:$0xff]   ;;  %4259 = vmatpush3.bf16.msra.mxu1 %v3494_v63 }
 0xfb7   : > { %4116 = vmatprep.subr.bf16.mxu0 %v4510_v5  ;;  %3650 = vmatprep.subr.bf16.mxu1 %v4518_v38  ;;  %v4531_v5 = vld [vmem:[#allocation8 + $0x20] ss:$8 sps:$4 sm:$0xff]  }
 0xfb8   : > { %4117 = vmatpush3.bf16.msra.mxu0 %v4511_v0 }
 0xfb9   : > { %4118 = vmatprep.subr.bf16.mxu0 %v4512_v10 }
 0xfbc   : > { %4119 = vmatpush3.bf16.msra.mxu0 %v4513_v6  ;;  %v4536_v6 = vld [vmem:[#allocation8 + $0x14] ss:$8 sps:$4 sm:$0xff]  }
 0xfbd   : > { %4120 = vmatprep.subr.bf16.mxu0 %v4514_v33  ;;  %4261 = vmatmul.mubr.msk.bf16.vlgmr.msra.gmra.mxu1 %vm1250_vm2, %v3488_v26  ;;  %v4534_v33 = vld [vmem:[#allocation8 + $0x10] ss:$8 sps:$4 sm:$0xff]   ;;  %v4537_v26 = vld [vmem:[#allocation8] ss:$8 sps:$4 sm:$0xff]  }
 0xfbe   : > { %3682 = vmatprep.mubr.bf16.mxu1 %v4769_v22  ;;  %3651 = vmatpush1.bf16.msra.mxu1 %v4516_v41 }
 0xfbf   : > { %3652 = vmatprep.subr.bf16.mxu1 %v4521_v31 }
 0xfc0   : > { %4121 = vmatpush3.bf16.msra.mxu0 %v4515_v8 }
 0xfc2   : > { %3653 = vmatpush1.bf16.msra.mxu1 %v4519_v45 }
 0xfc3   : > { %3654 = vmatprep.subr.bf16.mxu1 %v4524_v37 }
 0xfc6   : > { %3655 = vmatpush1.bf16.msra.mxu1 %v4522_v39 }
 0xfc7   : > { %3656 = vmatprep.subr.bf16.mxu1 %v4527_v4 }
 0xfca   : > { %3657 = vmatpush1.bf16.msra.mxu1 %v4525_v25 }
 0xfcb   : > { %3658 = vmatprep.subr.bf16.mxu1 %v4530_v32 }
0x1075   : > { %v3263_v28 = vpop.f32.mrf.mxu1 }
0x1076   : > { %v3264_v34 = vadd.f32 %v3263_v28, %v3144_v21 }
0x1077   : > { %v3265_v36 = vpop.f32.mrf.mxu1 }
0x1078   : > { %v3270_v40 = vmul.f32 %v3264_v34, %v3264_v34  ;;  %v3266_v43 = vadd.f32 %v3265_v36, %v3148_v9 }
0x1079   : > { %v3267_v48 = vpop.f32.mrf.mxu1 }
0x107a   : > { %v3272_v49 = vmul.f32 %v3270_v40, %v3264_v34  ;;  %v3271_v51 = vmul.f32 %v3266_v43, %v3266_v43  ;;  %v3480_v48 = vrot.slane %v5228_v47, %v1976_v12 }
0x107b   : > { %v3268_v53 = vpop.f32.mrf.mxu1 }
0x107c   : > { %v3274_v54 = vmul.f32 0.044715, %v3272_v49  ;;  %v3273_v55 = vmul.f32 %v3271_v51, %v3266_v43  ;;  %v3485_v53 = vrot.slane %v5228_v47, %v1981_v16 }
0x107d   : > { %v3530_v0 = vpop.f32.mrf.mxu1 }
0x107e   : > { %v3276_v27 = vadd.f32 %v3274_v54, %v3264_v34  ;;  %v3275_v56 = vmul.f32 0.044715, %v3273_v55  ;;  %v3539_v55 = vrot.slane %v3530_v0, %v4999_v46 }
0x107f   : > { %v4262_v10 = vpop.f32.mrf.mxu1 }
0x1080   : > { %v3278_v22 = vmul.f32 0.7978846, %v3276_v27  ;;  %v3277_v57 = vadd.f32 %v3275_v56, %v3266_v43 }
0x1081   : > { %v3533_v8 = vpop.f32.mrf.mxu1 }
0x1082   : > { %4568 = vtanh.f32 %v3278_v22  ;;  %v3279_v58 = vmul.f32 0.7978846, %v3277_v57  ;;  %v3558_v57 = vld [vmem:[%s5479_s10] sm:$0x3] }
0x1083   : > { %v4263_v20 = vpop.f32.mrf.mxu1  ;;  %v3567_v12 = vrot.slane %v3558_v57, %v5156_v13 }
0x1084   : > { %4570 = vtanh.f32 %v3279_v58  ;;  %v3563_v58 = vrot.slane %v3558_v57, %v4999_v46 }
0x108f   : > { %v4569_v59 = vpop.eup %4568 }
0x1090   : > { %v3282_v14 = vadd.f32 1.0, %v4569_v59 }
0x1091   : > { %v4571_v35 = vpop.eup %4570 }
0x1092   : > { %v3283_v60 = vadd.f32 1.0, %v4571_v35  ;;  %v3284_v61 = vmul.f32 0.5, %v3282_v14 }
0x1094   : > { %v3285_v52 = vmul.f32 0.5, %v3283_v60  ;;  %v3286_v62 = vmul.f32 %v3284_v61, %v3264_v34 }
0x1096   : > { %v3287_v2 = vmul.f32 %v3285_v52, %v3266_v43  ;;  %v3288_v7 = vpack.c.bf16 %v3286_v62, %v3286_v62 }
0x1098   : > { %v3289_v3 = vpack.c.bf16 %v3287_v2, %v3287_v2 }
0x109a   : > { %3455 = vmatprep.mubr.bf16.mxu0 %v3289_v3 }
0x109b   : > { %3456 = vmatmul.mubr.bf16.vlgmr.msra.gmra.mxu0 %v3288_v7 }
0x115b   : > { %v4122_v17 = vpop.f32.mrf.mxu0 }
0x115d   : > { %v4123_v19 = vpop.f32.mrf.mxu0 }
0x115e   : > { %v4124_v11 = vadd.f32 %v4123_v19, %v4122_v17 }
0x115f   : > { %v4125_v23 = vpop.f32.mrf.mxu0 }
0x1160   : > { %v3458_v29 = vadd.f32 %v4124_v11, %v3326_v18 }
0x1161   : > { %v4126_v15 = vpop.f32.mrf.mxu0 }
0x1162   : > { %v3463_v50 = vadd.f32 %v3458_v29, %v5393_v24  ;;  %v4528_v24 = vld [vmem:[#allocation8 + $0x30] ss:$8 sps:$4 sm:$0xff]  }
0x1163   : > { %3659 = vmatpush1.bf16.msra.mxu1 %v4528_v24 }
0x1164   : > { %3464 = vadd.xlane.f32.xlu0 %v3463_v50  ;;  %v3467_v30 = vmul.f32 %v3463_v50, %v3463_v50  ;;  %3660 = vmatprep.subr.bf16.mxu1 %v4533_v42 }
0x1167   : > { %3661 = vmatpush1.bf16.msra.mxu1 %v4531_v5 }
0x1168   : > { %3468 = vadd.xlane.f32.xlu0 %v3467_v30  ;;  %3662 = vmatprep.subr.bf16.mxu1 %v4536_v6 }
0x116b   : > { %3663 = vmatpush1.bf16.msra.mxu1 %v4534_v33 }
0x116c   : > { %3664 = vmatprep.subr.bf16.mxu1 %v4539_v1 }
0x116f   : > { %3665 = vmatpush1.bf16.msra.mxu1 %v4537_v26 }
0x11ed   : > { %v3465_v63 = vpop.xlane.xlu0 %3464 }
0x11ee   : > { %v3466_v21 = vmul.f32 0.0078125, %v3465_v63 }
0x11f0   : > { %v3471_v28 = vmul.f32 %v3466_v21, %v3466_v21  ;;  %v3473_v43 = vsub.f32 %v3463_v50, %v3466_v21 }
0x11f1   : > { %v3469_v9 = vpop.xlane.xlu0 %3468 }
0x11f2   : > { %v3470_v34 = vmul.f32 0.0078125, %v3469_v9 }
0x11f4   : > { %v3472_v36 = vsub.f32 %v3470_v34, %v3471_v28 }
0x11f6   : > { %v3474_v40 = vadd.f32 1e-12, %v3472_v36 }
0x11f8   : > { %4572 = vrsqrt.f32 %v3474_v40 }
0x1205   : > { %v4573_v49 = vpop.eup %4572 }
0x1206   : > { %v3476_v51 = vmul.f32 %v4573_v49, %v3473_v43 }
0x1208   : > { %v3481_v54 = vmul.f32 %v3480_v48, %v3476_v51 }
0x120a   : > { %v3486_v27 = vadd.f32 %v3485_v53, %v3481_v54 }
0x120c   : > { %v3540_v56 = vadd.f32 %v3539_v55, %v3486_v27 }
0x120e   : > { %v3541_v22 = vpack.c.bf16 %v3540_v56, %v3540_v56 }
0x1210   : > { %3683 = vmatmul.mubr.bf16.vlgmr.msra.gmra.mxu1 %v3541_v22 }
0x12d0   : > { %v3684_v59 = vpop.f32.mrf.mxu1 }
0x12d1   : > { %v3685_v44 = vadd.f32 %v3684_v59, %v3563_v58 }
0x12d2   : > { %v3686_v14 = vpop.f32.mrf.mxu1 }
0x12d3   : > { %v3687_v35 = vadd.f32 %v3686_v14, %v3567_v12 }
0x12d4   : > { %v3688_v16 = vpop.f32.mrf.mxu1 }
0x12d5   : > { %v3691_v47 = vmax.f32 %v3685_v44, %v3687_v35 }
0x12d6   : > { %v3689_v60 = vpop.f32.mrf.mxu1 }
0x12d7   : > { %3692 = vmax.xlane.f32.xlu0 %v3691_v47 }
0x1360   : > { %v3693_v61 = vpop.xlane.xlu0 %3692 }
0x1361   : > { %v3694_v52 = vsub.f32 %v3685_v44, %v3693_v61  ;;  %v3695_v62 = vsub.f32 %v3687_v35, %v3693_v61 }
0x1363   : > { %v3696_v2 = vmul.f32 1.442695, %v3694_v52  ;;  %v3698_v3 = vmul.f32 1.442695, %v3695_v62 }
0x1365   : > { %4574 = vpow2.f32 %v3696_v2 }
0x1366   : > { %4576 = vpow2.f32 %v3698_v3 }
0x1372   : > { %v4575_v46 = vpop.eup %4574 }
0x1373   : > { %v4577_v7 = vpop.eup %4576 }
0x1374   : > { %v3700_v13 = vadd.f32 %v4577_v7, %v4575_v46 }
0x1376   : > { %3701 = vadd.xlane.f32.xlu0 %v3700_v13 }
0x13ff   : > { %v3702_v17 = vpop.xlane.xlu0 %3701 }
0x1400   : > { %4578 = vlog2.f32 %v3702_v17 }
0x140d   : > { %v4579_v18 = vpop.eup %4578 }
0x140e   : > { %v3704_v19 = vmul.f32 0.6931472, %v4579_v18 }
0x1410   : > { %v3705_v11 = vadd.f32 %v3704_v19, %v3693_v61 }
0x1412   : > { %v3706_v23 = vsub.f32 %v3685_v44, %v3705_v11  ;;  %v3707_v29 = vsub.f32 %v3687_v35, %v3705_v11 }
0x1414   : > { %3708 = vst [vmem:[%s447_s23] sm:$0xff] %v3706_v23  ;;  %3709 = vst [vmem:[%s447_s23 + $0x8] sm:$0xff] %v3707_v29 }
0x1415   : > { %4697 = shalt.err (!%p4694_p11)
}
0x1416   : > { %s4698_s24 = scalar_lea.hbm %s5434_s16, 256  ;;  %s4702_s19 = scalar_lea.hbm %s5480_s11, 512 }
0x1417   : > { %p4699_p0 = scmp.ne.s32.totalorder %s5434_s16, %s4698_s24  ;;  %p4703_p3 = scmp.lt.s32.totalorder %s5434_s16, %s5480_s11 }
0x1418   : > { %p4704_p10 = scmp.lt.s32.totalorder %s4702_s19, %s4698_s24 }
0x1419   : > { %p4700_p1 = pnand %p4699_p0, %p4873_p5 }
0x141a   : > { %p4705_p9 = por %p4704_p10, %p4703_p3 }
0x141b   : > { %p4701_p2 = pneg %p4700_p1 }
0x141d   : > { %p4706_p12 = pnand %p4705_p9, %p4701_p2 }
0x141f   : > { %4709 = shalt.err (!%p4706_p12)
}
0x1420   : > { %4280 = dma.vmem_to_hbm [thread:$0]  (%p4873_p5), %s3726_s26, 256, %s5434_s16, %s3711_s12  }
0x1421 PF: > { %p4307_p13 = scmp.ge.s32.totalorder %s4756_s20, 2  ;;  %s3737_s13 = sand.u32 1, %s4744_s17  }
0x1422   : > { %s3738_s22 = scalar_lea.sflag [#allocation4], %s3737_s13 }
0x1423   : > { %p4296_p4 = pnand %p4307_p13, %p4877_p6 }
0x1425   : > { %p4297_p7 = pneg %p4296_p4 }
0x1427   : > { %4739 = dma.done.wait (%p4297_p7), %s3738_s22, 256  }
0x1428   : > { %4741 = vsyncadd (%p4297_p7), %s3738_s22, 4294967040  ;;  %s5493_s20 = sld [smem:[#allocation16_spill]]  ;;  %s5496_s17 = smov %s4748_s18 }
0x1429   : > { %s5494_s21 = sld [smem:[#allocation15_spill]] }
0x142a   : > { %s5495_s19 = sld [smem:[#allocation17_spill]] }
0x142e   : > { %p24_p8 = scmp.ge.s32.totalorder %s5493_s20, 4  }
0x142f   : > { %s5497_s18 = smov %s5494_s21 }
0x1430   :  { %26 = sbr.rel (!%p24_p8) target bundleno = 6 (0x6), region = 124 }
0x1435   :  { %3743 = vsyncpa [#allocation3], 1 }
0x1436   :  { %3745 = vsyncpa [#allocation3 + $0x1], 1 }
0x1437   :  { %3746 = vsyncpa [#allocation6], 1 }
0x1438   :  { %3747 = vsyncpa [#allocation9], 1 }
0x1439   :  { %3748 = vsyncpa [#allocation4], 1 }
0x143a   :  { %3750 = vsyncpa [#allocation4 + $0x1], 1 }

</bundles_post_ra>
